<compile_context>
chip_gen: v7x
topology: tpu7x:2x2x1
jax: 0.10.0
libtpu: 0.0.40
codegen_flags: <defaults>
</compile_context>

<pallas_src>
import jax
import jax.numpy as jnp
from jax.experimental import pallas as pl
from jax.experimental.pallas import tpu as pltpu

_LANE = 128
_SUBLANE = 8
_VMEM_BUDGET_BYTES = 40 * 1024 * 1024   # conservative across v5e/v6e/v7x


def _round_up(v, m):
    return ((v + m - 1) // m) * m


def _num_tensorcores():
    """TensorCores per chip (v7x: 2, v5e/v6e: 1). Robust, always falls back to 1."""
    try:
        info = pltpu.get_tpu_info()
        for attr in ("num_cores", "num_tensorcores", "tensorcore_count",
                     "cores_per_chip"):
            v = getattr(info, attr, None)
            if isinstance(v, int) and v > 0:
                return v
    except Exception:
        pass
    try:
        kind = jax.devices()[0].device_kind.lower()
        if "v7" in kind:
            return 2
    except Exception:
        pass
    return 1


def _chunk_footprint_bytes(mc, b, ci, co):
    # xr+xi (bf16), wr+wi (bf16), yr+yi (f32); each double-buffered by default.
    x_b = 2 * mc * b * ci * 2
    w_b = 2 * mc * ci * co * 2
    o_b = 2 * mc * b * co * 4
    return 2 * (x_b + w_b + o_b)


def _choose_num_chunks(M, b, ci, co, n_tc):
    # 1 chunk on single-TC chips; multiple of the TC count on v7x.
    n = n_tc if (n_tc > 1 and M % n_tc == 0) else 1
    while (_chunk_footprint_bytes(M // n, b, ci, co) > _VMEM_BUDGET_BYTES
           and M % (2 * n) == 0):
        n *= 2
    return n


# ----------------------------------------------------------------------------
# Kernel: per-mode complex channel mix as 4 accumulated real matmuls.
#   yr[m] = xr[m] @ wr[m] - xi[m] @ wi[m]
#   yi[m] = xr[m] @ wi[m] + xi[m] @ wr[m]
# xr/xi : (Mc, Bp, Cip) bf16   wr/wi : (Mc, Cip, Cop) bf16   yr/yi : (Mc, Bp, Cop) f32
# ----------------------------------------------------------------------------
def _spectral_mix_kernel(xr_ref, xi_ref, wr_ref, wi_ref, yr_ref, yi_ref):
    dn = (((2,), (1,)), ((0,), (0,)))   # contract channels, batch over modes
    xr = xr_ref[...]
    xi = xi_ref[...]
    wr = wr_ref[...]
    wi = wi_ref[...]
    rr = jax.lax.dot_general(xr, wr, dn, preferred_element_type=jnp.float32)
    ii = jax.lax.dot_general(xi, wi, dn, preferred_element_type=jnp.float32)
    ri = jax.lax.dot_general(xr, wi, dn, preferred_element_type=jnp.float32)
    ir = jax.lax.dot_general(xi, wr, dn, preferred_element_type=jnp.float32)
    yr_ref[...] = rr - ii
    yi_ref[...] = ri + ir


def spectral_mix(xr, xi, wr, wi):
    """xr/xi: (M, Bp, Cip) bf16; wr/wi: (M, Cip, Cop) bf16 -> (yr, yi) f32."""
    M, Bp, Cip = xr.shape
    Cop = wr.shape[2]

    n_tc = _num_tensorcores()
    n_chunks = _choose_num_chunks(M, Bp, Cip, Cop, n_tc)
    Mc = M // n_chunks

    x_spec = pl.BlockSpec((Mc, Bp, Cip), lambda m: (m, 0, 0))
    o_spec = pl.BlockSpec((Mc, Bp, Cop), lambda m: (m, 0, 0))

    # With <=1 grid step per core, double-buffering the dominant (weight) tiles
    # holds 2x the bytes with nothing to overlap -> single buffer (v7x VMEM relief).
    w_kwargs = {}
    w_chunk_bytes = 2 * Mc * Cip * Cop * 2
    if w_chunk_bytes > 8 * 1024 * 1024 and n_chunks <= n_tc:
        w_kwargs["pipeline_mode"] = pl.Buffered(1)
    w_spec = pl.BlockSpec((Mc, Cip, Cop), lambda m: (m, 0, 0), **w_kwargs)

    footprint = _chunk_footprint_bytes(Mc, Bp, Cip, Cop)
    vmem_limit = int(max(32 * 1024 * 1024,
                         min(footprint + (4 << 20), 48 * 1024 * 1024)))

    out_sd = jax.ShapeDtypeStruct((M, Bp, Cop), jnp.float32)
    return pl.pallas_call(
        _spectral_mix_kernel,
        out_shape=(out_sd, out_sd),
        grid=(n_chunks,),
        in_specs=[x_spec, x_spec, w_spec, w_spec],
        out_specs=(o_spec, o_spec),
        compiler_params=pltpu.CompilerParams(
            dimension_semantics=("parallel",),
            vmem_limit_bytes=vmem_limit),
    )(xr, xi, wr, wi)


# ----------------------------------------------------------------------------
# Weight packing (done ONCE, outside the per-forward path):
#   (Ci, Co, M) complex  ->  wr, wi : (M, Ci_pad, Co_pad) bf16, zero-padded to
#   lane-dense (multiple-of-128) channel dims.
# ----------------------------------------------------------------------------
def pack_weights(weights1):
    Ci, Co, M = weights1.shape
    Ci_p = _round_up(Ci, _LANE)
    Co_p = _round_up(Co, _LANE)
    pad = ((0, 0), (0, Ci_p - Ci), (0, Co_p - Co))
    wr = jnp.pad(jnp.transpose(jnp.real(weights1), (2, 0, 1)), pad)
    wi = jnp.pad(jnp.transpose(jnp.imag(weights1), (2, 0, 1)), pad)
    return wr.astype(jnp.bfloat16), wi.astype(jnp.bfloat16)


# ----------------------------------------------------------------------------
# Full SpectralConv1d forward
# ----------------------------------------------------------------------------
def spectral_conv1d_forward(x, wr, wi, out_channels):
    """x: (B, Ci, N) f32; wr/wi: (M, Ci_pad, Co_pad) bf16 (packed weights)."""
    B, Ci, N = x.shape
    M, Ci_p, Co_p = wr.shape
    Co = out_channels
    Nf = N // 2 + 1
    B_p = _round_up(B, _SUBLANE)

    # TODO(synk): rfft/irfft have no Pallas TPU equivalent; they stay in XLA.
    x_ft = jnp.fft.rfft(x)                                  # (B, Ci, Nf) complex64
    xm = x_ft[:, :, :M]                                     # retained modes

    def to_kernel_layout(a):                                # (B, Ci, M) -> (M, Bp, Cip) bf16
        a = jnp.transpose(a, (2, 0, 1))
        a = jnp.pad(a, ((0, 0), (0, B_p - B), (0, Ci_p - Ci)))
        return a.astype(jnp.bfloat16)

    xr = to_kernel_layout(jnp.real(xm))
    xi = to_kernel_layout(jnp.imag(xm))

    yr, yi = spectral_mix(xr, xi, wr, wi)                   # (M, Bp, Cop) f32 each

    out_c = jax.lax.complex(yr[:, :B, :Co], yi[:, :B, :Co])  # (M, B, Co)
    out_c = jnp.transpose(out_c, (1, 2, 0))                  # (B, Co, M)

    out_ft = jnp.zeros((B, Co, Nf), dtype=jnp.complex64)
    out_ft = out_ft.at[:, :, :M].set(out_c)
    return jnp.fft.irfft(out_ft, n=N)                        # (B, Co, N) float32


# ----------------------------------------------------------------------------
# Parameter init mirroring the nn.Module:
#   scale * torch.rand(in, out, modes1, dtype=cfloat)   (real & imag U[0, scale))
# ----------------------------------------------------------------------------
def init_weights(key, in_channels, out_channels, modes1):
    scale = 1.0 / (in_channels * out_channels)
    kr, ki = jax.random.split(key)
    shape = (in_channels, out_channels, modes1)
    return jax.lax.complex(
        scale * jax.random.uniform(kr, shape, jnp.float32),
        scale * jax.random.uniform(ki, shape, jnp.float32))


if __name__ == "__main__":
    B, Ci, Co, N, modes1 = 2, 4, 4, 16, 8

    key = jax.random.PRNGKey(0)
    kx, kw = jax.random.split(key)
    x = jax.random.normal(kx, (B, Ci, N), dtype=jnp.float32)
    weights1 = init_weights(kw, Ci, Co, modes1)

    wr, wi = pack_weights(weights1)          # packed once, loop-invariant

    fwd = jax.jit(lambda xx: spectral_conv1d_forward(xx, wr, wi, Co))
    out = jax.block_until_ready(fwd(x))

    # Pure-JAX reference of the module forward (correctness gate).
    x_ft = jnp.fft.rfft(x)
    ref_modes = jnp.einsum('bix,iox->box', x_ft[:, :, :modes1], weights1)
    ref_ft = jnp.zeros((B, Co, N // 2 + 1), dtype=jnp.complex64)
    ref_ft = ref_ft.at[:, :, :modes1].set(ref_modes)
    ref = jnp.fft.irfft(ref_ft, n=N)

    assert out.shape == (B, Co, N), out.shape
    assert out.dtype == jnp.float32
    # bf16 kernel inputs (f32 accumulation) -> loosened tolerance vs complex64 ref.
    max_err = float(jnp.max(jnp.abs(out - ref)))
    assert jnp.allclose(out, ref, atol=2e-2, rtol=2e-2), max_err
    print("KERNEL_OK")
</pallas_src>

<mosaic_0001>
module attributes {stable_mosaic.version = 11 : i64} {
  func.func @_spectral_mix_kernel(%arg0: i32, %arg1: memref<8x8x128xbf16, #tpu.memory_space<vmem>>, %arg2: memref<8x8x128xbf16, #tpu.memory_space<vmem>>, %arg3: memref<8x128x128xbf16, #tpu.memory_space<vmem>>, %arg4: memref<8x128x128xbf16, #tpu.memory_space<vmem>>, %arg5: memref<8x8x128xf32, #tpu.memory_space<vmem>>, %arg6: memref<8x8x128xf32, #tpu.memory_space<vmem>>) attributes {dimension_semantics = [#tpu.dimension_semantics<parallel>], iteration_bounds = array<i64: 1>, scalar_prefetch = 0 : i64, scratch_operands = 0 : i64, tpu.core_type = #tpu.core_type<tc>, window_params = [{transform_indices = @transform_0, window_bounds = array<i64: 8, 8, 128>}, {transform_indices = @transform_1, window_bounds = array<i64: 8, 8, 128>}, {transform_indices = @transform_2, window_bounds = array<i64: 8, 128, 128>}, {transform_indices = @transform_3, window_bounds = array<i64: 8, 128, 128>}, {transform_indices = @transform_4, window_bounds = array<i64: 8, 8, 128>}, {transform_indices = @transform_5, window_bounds = array<i64: 8, 8, 128>}]} {
    %c0 = arith.constant 0 : index
    %c0_0 = arith.constant 0 : index
    %c0_1 = arith.constant 0 : index
    %0 = vector.load %arg1[%c0, %c0_0, %c0_1] : memref<8x8x128xbf16, #tpu.memory_space<vmem>>, vector<8x8x128xbf16>
    %c0_2 = arith.constant 0 : index
    %c0_3 = arith.constant 0 : index
    %c0_4 = arith.constant 0 : index
    %1 = vector.load %arg2[%c0_2, %c0_3, %c0_4] : memref<8x8x128xbf16, #tpu.memory_space<vmem>>, vector<8x8x128xbf16>
    %c0_5 = arith.constant 0 : index
    %c0_6 = arith.constant 0 : index
    %c0_7 = arith.constant 0 : index
    %2 = vector.load %arg3[%c0_5, %c0_6, %c0_7] : memref<8x128x128xbf16, #tpu.memory_space<vmem>>, vector<8x128x128xbf16>
    %c0_8 = arith.constant 0 : index
    %c0_9 = arith.constant 0 : index
    %c0_10 = arith.constant 0 : index
    %3 = vector.load %arg4[%c0_8, %c0_9, %c0_10] : memref<8x128x128xbf16, #tpu.memory_space<vmem>>, vector<8x128x128xbf16>
    %cst = arith.constant dense<0.000000e+00> : vector<8x8x128xf32>
    %4 = tpu.matmul %0, %2, %cst {dimension_numbers = #tpu.dot_dimension_numbers<[2], [1], [1], [2], [0, 0, 0, 1, 1, 2], [0], [0]>} : vector<8x8x128xbf16>, vector<8x128x128xbf16>, vector<8x8x128xf32> -> vector<8x8x128xf32>
    %cst_11 = arith.constant dense<0.000000e+00> : vector<8x8x128xf32>
    %5 = tpu.matmul %1, %3, %cst_11 {dimension_numbers = #tpu.dot_dimension_numbers<[2], [1], [1], [2], [0, 0, 0, 1, 1, 2], [0], [0]>} : vector<8x8x128xbf16>, vector<8x128x128xbf16>, vector<8x8x128xf32> -> vector<8x8x128xf32>
    %cst_12 = arith.constant dense<0.000000e+00> : vector<8x8x128xf32>
    %6 = tpu.matmul %0, %3, %cst_12 {dimension_numbers = #tpu.dot_dimension_numbers<[2], [1], [1], [2], [0, 0, 0, 1, 1, 2], [0], [0]>} : vector<8x8x128xbf16>, vector<8x128x128xbf16>, vector<8x8x128xf32> -> vector<8x8x128xf32>
    %cst_13 = arith.constant dense<0.000000e+00> : vector<8x8x128xf32>
    %7 = tpu.matmul %1, %2, %cst_13 {dimension_numbers = #tpu.dot_dimension_numbers<[2], [1], [1], [2], [0, 0, 0, 1, 1, 2], [0], [0]>} : vector<8x8x128xbf16>, vector<8x128x128xbf16>, vector<8x8x128xf32> -> vector<8x8x128xf32>
    %8 = arith.subf %4, %5 : vector<8x8x128xf32>
    %c0_14 = arith.constant 0 : index
    %c0_15 = arith.constant 0 : index
    %c0_16 = arith.constant 0 : index
    %9 = vector.load %arg5[%c0_14, %c0_15, %c0_16] : memref<8x8x128xf32, #tpu.memory_space<vmem>>, vector<8x8x128xf32>
    tpu.vector_store %arg5[%c0_14, %c0_15, %c0_16], %8 {strides = array<i32>} : memref<8x8x128xf32, #tpu.memory_space<vmem>>, vector<8x8x128xf32>,
    %10 = arith.addf %6, %7 : vector<8x8x128xf32>
    %c0_17 = arith.constant 0 : index
    %c0_18 = arith.constant 0 : index
    %c0_19 = arith.constant 0 : index
    %11 = vector.load %arg6[%c0_17, %c0_18, %c0_19] : memref<8x8x128xf32, #tpu.memory_space<vmem>>, vector<8x8x128xf32>
    tpu.vector_store %arg6[%c0_17, %c0_18, %c0_19], %10 {strides = array<i32>} : memref<8x8x128xf32, #tpu.memory_space<vmem>>, vector<8x8x128xf32>,
    return
  }
  func.func @transform_0(%arg0: i32) -> (i32, i32, i32) {
    %c0_i32 = arith.constant 0 : i32
    %c0_i32_0 = arith.constant 0 : i32
    %c0_i32_1 = arith.constant 0 : i32
    return %arg0, %c0_i32, %c0_i32_0 : i32, i32, i32
  }
  func.func @transform_1(%arg0: i32) -> (i32, i32, i32) {
    %c0_i32 = arith.constant 0 : i32
    %c0_i32_0 = arith.constant 0 : i32
    %c0_i32_1 = arith.constant 0 : i32
    return %arg0, %c0_i32, %c0_i32_0 : i32, i32, i32
  }
  func.func @transform_2(%arg0: i32) -> (i32, i32, i32) {
    %c0_i32 = arith.constant 0 : i32
    %c0_i32_0 = arith.constant 0 : i32
    %c0_i32_1 = arith.constant 0 : i32
    return %arg0, %c0_i32, %c0_i32_0 : i32, i32, i32
  }
  func.func @transform_3(%arg0: i32) -> (i32, i32, i32) {
    %c0_i32 = arith.constant 0 : i32
    %c0_i32_0 = arith.constant 0 : i32
    %c0_i32_1 = arith.constant 0 : i32
    return %arg0, %c0_i32, %c0_i32_0 : i32, i32, i32
  }
  func.func @transform_4(%arg0: i32) -> (i32, i32, i32) {
    %c0_i32 = arith.constant 0 : i32
    %c0_i32_0 = arith.constant 0 : i32
    %c0_i32_1 = arith.constant 0 : i32
    return %arg0, %c0_i32, %c0_i32_0 : i32, i32, i32
  }
  func.func @transform_5(%arg0: i32) -> (i32, i32, i32) {
    %c0_i32 = arith.constant 0 : i32
    %c0_i32_0 = arith.constant 0 : i32
    %c0_i32_1 = arith.constant 0 : i32
    return %arg0, %c0_i32, %c0_i32_0 : i32, i32, i32
  }
}

</mosaic_0001>

<bundles_post_ra>
// kernel: reverse.1
= control target key start
LH: loop header
LB: loop body
LE: loop exit
PB: predicated region body
PF: predicated region fallthrough
CT: control target
= control target key end

     0   :  { %s92_s0 = inlined_call_operand.vmem [shape: f32[2,4,7], index: 0, kind: input, shape index: {}]   ;;  %s93_s1 = inlined_call_operand.vmem [shape: f32[2,4,7], index: 1, kind: output, shape index: {}]  }
   0x1   :  { %v28_v0 = vld [vmem:[%s92_s0 + $0xc] sm:$0x3]  ;;  %v29_v1 = vld [vmem:[%s92_s0 + $0xa] sm:$0x3]  ;;  %v31_v2 = vld [vmem:[%s92_s0 + $0x8] sm:$0x3] }
   0x2   :  { %4 = vst [vmem:[%s93_s1] sm:$0x3] %v28_v0  ;;  %30 = vst [vmem:[%s93_s1 + $0x2] sm:$0x3] %v29_v1  ;;  %v33_v3 = vld [vmem:[%s92_s0 + $0x6] sm:$0x3] }
   0x3   :  { %32 = vst [vmem:[%s93_s1 + $0x4] sm:$0x3] %v31_v2  ;;  %v35_v4 = vld [vmem:[%s92_s0 + $0x4] sm:$0x3]  ;;  %v37_v5 = vld [vmem:[%s92_s0 + $0x2] sm:$0x3] }
   0x4   :  { %34 = vst [vmem:[%s93_s1 + $0x6] sm:$0x3] %v33_v3  ;;  %36 = vst [vmem:[%s93_s1 + $0x8] sm:$0x3] %v35_v4  ;;  %v25_v6 = vld [vmem:[%s92_s0] sm:$0x3] }
   0x5   :  { %38 = vst [vmem:[%s93_s1 + $0xa] sm:$0x3] %v37_v5  ;;  %39 = vst [vmem:[%s93_s1 + $0xc] sm:$0x3] %v25_v6 }

// kernel: _lambda_.1
= control target key start
LH: loop header
LB: loop body
LE: loop exit
PB: predicated region body
PF: predicated region fallthrough
CT: control target
= control target key end

     0   :  { %11 = vsyncpa [#allocation3], 0  ;;  %s4616_s0 = inlined_call_operand.vmem [shape: bf16[8,8,128], index: 0, kind: input, shape index: {}]   ;;  %s4617_s1 = inlined_call_operand.vmem [shape: bf16[8,8,128], index: 1, kind: input, shape index: {}]   ;;  %s4618_s2 = inlined_call_operand.hbm [shape: bf16[8,128,128], index: 2, kind: input, shape index: {}]   ;;  %s4619_s3 = inlined_call_operand.hbm [shape: bf16[8,128,128], index: 3, kind: input, shape index: {}]   ;;  %s4620_s4 = inlined_call_operand.vmem [shape: f32[8,8,128], index: 4, kind: output, shape index: {0}]   ;;  %s4621_s5 = inlined_call_operand.vmem [shape: f32[8,8,128], index: 5, kind: output, shape index: {1}]  }
   0x1   :  { %12 = vsyncpa [#allocation5], 0  ;;  %s3724_s18 = smov [#allocation2]   ;;  %s3676_s22 = scalar_lea.hbm %s4618_s2, 8192 }
   0x2   :  { %s22_s19 = sshll.u32 %s3724_s18, 4  ;;  %p3677_p0 = scmp.ne.s32.totalorder %s4618_s2, %s3676_s22  ;;  %s23_s19 = int_to_ptr.vmem [resolvable:$true] %s22_s19 }
   0x3   :  { %p3680_p1 = scmp.lt.u32.totalorder %s3676_s22, %s4618_s2 }
   0x5   :  { %p3682_p2 = pnand %p3680_p1, %p3677_p0 }
   0x7   :  { %3685 = shalt.err (!%p3682_p2)
}
   0x8   :  { %s3686_s27 = scalar_lea.vmem %s23_s19, 8192  ;;  %p3691_p4 = scmp.lt.s32.totalorder %s23_s19, %s23_s19 }
   0x9   :  { %p3687_p3 = scmp.ne.s32.totalorder %s23_s19, %s3686_s27  ;;  %p3692_p5 = scmp.lt.s32.totalorder %s3686_s27, %s3686_s27 }
   0xb   :  { %p3693_p6 = por %p3692_p5, %p3691_p4 }
   0xd   :  { %p3694_p7 = pnand %p3693_p6, %p3687_p3 }
   0xf   :  { %3697 = shalt.err (!%p3694_p7)
}
  0x10   :  { %s3725_s28 = smov 64   ;;  %s3726_s29 = smov 4  }
  0x11   :  { %28 = dma.hbm_to_vmem [thread:$0]  %s4618_s2, 8192, %s23_s19, [#allocation3], %s3725_s28, %s3725_s28, %s3726_s29  }
  0x12   :  { %s3727_s7 = smov [#allocation4]   ;;  %s3698_s11 = scalar_lea.hbm %s4619_s3, 8192 }
  0x13   :  { %s34_s8 = sshll.u32 %s3727_s7, 4  ;;  %p3699_p8 = scmp.ne.s32.totalorder %s4619_s3, %s3698_s11  ;;  %s35_s8 = int_to_ptr.vmem [resolvable:$true] %s34_s8 }
  0x14   :  { %p3702_p9 = scmp.lt.u32.totalorder %s3698_s11, %s4619_s3 }
  0x16   :  { %p3704_p10 = pnand %p3702_p9, %p3699_p8 }
  0x18   :  { %3707 = shalt.err (!%p3704_p10)
}
  0x19   :  { %s3708_s16 = scalar_lea.vmem %s35_s8, 8192  ;;  %p3713_p12 = scmp.lt.s32.totalorder %s35_s8, %s35_s8 }
  0x1a   :  { %p3709_p11 = scmp.ne.s32.totalorder %s35_s8, %s3708_s16  ;;  %p3714_p13 = scmp.lt.s32.totalorder %s3708_s16, %s3708_s16 }
  0x1c   :  { %p3715_p0 = por %p3714_p13, %p3713_p12 }
  0x1e   :  { %p3716_p1 = pnand %p3715_p0, %p3709_p11 }
  0x20   :  { %3719 = shalt.err (!%p3716_p1)
}
  0x21   :  { %40 = dma.hbm_to_vmem [thread:$0]  %s4619_s3, 8192, %s35_s8, [#allocation5], %s3725_s28, %s3725_s28, %s3726_s29  }
  0x22   :  { %3720 = dma.done.wait [#allocation3], 8192  }
  0x23   :  { %3721 = vsyncadd [#allocation3], 4294959104 }
  0x24   :  { %3722 = dma.done.wait [#allocation5], 8192  }
  0x25   :  { %3723 = vsyncadd [#allocation5], 4294959104  ;;  %v3728_v0 = vmov 0.0   ;;  %vm3729_vm0 = vmmov 0   ;;  %v3496_v1 = vld [vmem:[#allocation2] sm:$0xff]   ;;  %v3498_v3 = vld [vmem:[#allocation2 + $0x8] sm:$0xff]  }
  0x26   :  { %2818 = vmatprep.subr.bf16.mxu0 %v3728_v0  ;;  %2838 = vmatprep.subr.bf16.mxu1 %v3728_v0  ;;  %v3497_v2 = vld [vmem:[#allocation2 + $0x40] sm:$0xff]   ;;  %v3499_v4 = vld [vmem:[#allocation2 + $0x48] sm:$0xff]   ;;  %v3500_v5 = vld [vmem:[#allocation2 + $0x10] sm:$0xff]  }
  0x27   :  { %2834 = vmatprep.mubr.msk.bf16.mxu0 %vm3729_vm0, %v3728_v0  ;;  %2854 = vmatprep.mubr.msk.bf16.mxu1 %vm3729_vm0, %v3728_v0  ;;  %v3501_v6 = vld [vmem:[#allocation2 + $0x50] sm:$0xff]   ;;  %v3502_v7 = vld [vmem:[#allocation2 + $0x18] sm:$0xff]   ;;  %v3504_v9 = vld [vmem:[#allocation2 + $0x20] sm:$0xff]  }
  0x28   :  { %2819 = vmatpush3.bf16.msra.mxu0 %v3496_v1  ;;  %2839 = vmatpush3.bf16.msra.mxu1 %v3497_v2  ;;  %v3503_v8 = vld [vmem:[#allocation2 + $0x58] sm:$0xff]   ;;  %v3505_v10 = vld [vmem:[#allocation2 + $0x60] sm:$0xff]   ;;  %v3506_v11 = vld [vmem:[#allocation2 + $0x28] sm:$0xff]  }
  0x29   :  { %2820 = vmatprep.subr.bf16.mxu0 %v3728_v0  ;;  %2840 = vmatprep.subr.bf16.mxu1 %v3728_v0  ;;  %v3507_v12 = vld [vmem:[#allocation2 + $0x68] sm:$0xff]   ;;  %v3508_v13 = vld [vmem:[#allocation2 + $0x30] sm:$0xff]   ;;  %v3510_v15 = vld [vmem:[#allocation2 + $0x38] sm:$0xff]  }
  0x2a   :  { %v3509_v14 = vld [vmem:[#allocation2 + $0x70] sm:$0xff]   ;;  %v3511_v16 = vld [vmem:[#allocation2 + $0x78] sm:$0xff]   ;;  %v48_v17 = vld [vmem:[%s4616_s0] sm:$0xf] }
  0x2b   :  { %v49_v18 = vld [vmem:[%s4616_s0 + $0x4] sm:$0xf]  ;;  %v3514_v21 = vld [vmem:[#allocation2 + $0x88] sm:$0xff]   ;;  %v3516_v23 = vld [vmem:[#allocation2 + $0x90] sm:$0xff]  }
  0x2c   :  { %2821 = vmatpush3.bf16.msra.mxu0 %v3498_v3  ;;  %2841 = vmatpush3.bf16.msra.mxu1 %v3499_v4  ;;  %v3512_v19 = vld [vmem:[#allocation2 + $0x80] sm:$0xff]   ;;  %v3515_v22 = vld [vmem:[#allocation2 + $0xc8] sm:$0xff]   ;;  %v3517_v24 = vld [vmem:[#allocation2 + $0xd0] sm:$0xff]  }
  0x2d   :  { %2822 = vmatprep.subr.bf16.mxu0 %v3728_v0  ;;  %2842 = vmatprep.subr.bf16.mxu1 %v3728_v0  ;;  %v3513_v20 = vld [vmem:[#allocation2 + $0xc0] sm:$0xff]   ;;  %v3518_v25 = vld [vmem:[#allocation2 + $0x98] sm:$0xff]   ;;  %v3522_v29 = vld [vmem:[#allocation2 + $0xa8] sm:$0xff]  }
  0x2e   :  { %v3519_v26 = vld [vmem:[#allocation2 + $0xd8] sm:$0xff]   ;;  %v3520_v27 = vld [vmem:[#allocation2 + $0xa0] sm:$0xff]   ;;  %v3523_v30 = vld [vmem:[#allocation2 + $0xe8] sm:$0xff]  }
  0x2f   :  { %v3521_v28 = vld [vmem:[#allocation2 + $0xe0] sm:$0xff]   ;;  %v3524_v31 = vld [vmem:[#allocation2 + $0xb0] sm:$0xff]   ;;  %v3526_v33 = vld [vmem:[#allocation2 + $0xb8] sm:$0xff]  }
  0x30   :  { %2823 = vmatpush3.bf16.msra.mxu0 %v3500_v5  ;;  %2843 = vmatpush3.bf16.msra.mxu1 %v3501_v6  ;;  %v3525_v32 = vld [vmem:[#allocation2 + $0xf0] sm:$0xff]   ;;  %v3527_v34 = vld [vmem:[#allocation2 + $0xf8] sm:$0xff]   ;;  %v50_v35 = vld [vmem:[%s4616_s0 + $0x8] sm:$0xf] }
  0x31   :  { %2824 = vmatprep.subr.bf16.mxu0 %v3728_v0  ;;  %2844 = vmatprep.subr.bf16.mxu1 %v3728_v0  ;;  %v51_v36 = vld [vmem:[%s4616_s0 + $0xc] sm:$0xf]  ;;  %v3528_v37 = vld [vmem:[#allocation2 + $0x100] sm:$0xff]   ;;  %v3532_v41 = vld [vmem:[#allocation2 + $0x110] sm:$0xff]  }
  0x32   :  { %v3529_v38 = vld [vmem:[#allocation2 + $0x140] sm:$0xff]   ;;  %v3530_v39 = vld [vmem:[#allocation2 + $0x108] sm:$0xff]   ;;  %v3533_v42 = vld [vmem:[#allocation2 + $0x150] sm:$0xff]  }
  0x33   :  { %v3531_v40 = vld [vmem:[#allocation2 + $0x148] sm:$0xff]   ;;  %v3534_v43 = vld [vmem:[#allocation2 + $0x118] sm:$0xff]   ;;  %v3536_v45 = vld [vmem:[#allocation2 + $0x120] sm:$0xff]  }
  0x34   :  { %2825 = vmatpush3.bf16.msra.mxu0 %v3502_v7  ;;  %2845 = vmatpush3.bf16.msra.mxu1 %v3503_v8  ;;  %v3535_v44 = vld [vmem:[#allocation2 + $0x158] sm:$0xff]   ;;  %v3537_v46 = vld [vmem:[#allocation2 + $0x160] sm:$0xff]   ;;  %v3538_v47 = vld [vmem:[#allocation2 + $0x128] sm:$0xff]  }
  0x35   :  { %2826 = vmatprep.subr.bf16.mxu0 %v3728_v0  ;;  %2846 = vmatprep.subr.bf16.mxu1 %v3728_v0  ;;  %v3539_v48 = vld [vmem:[#allocation2 + $0x168] sm:$0xff]   ;;  %v3852_v49 = vld [vmem:[#allocation2 + $0x130] sm:$0xff]   ;;  %v3859_v51 = vld [vmem:[#allocation2 + $0x138] sm:$0xff]  }
  0x36   :  { %v3855_v50 = vld [vmem:[#allocation2 + $0x170] sm:$0xff]   ;;  %v3863_v52 = vld [vmem:[#allocation2 + $0x178] sm:$0xff]   ;;  %v3873_v55 = vld [vmem:[#allocation2 + $0x180] sm:$0xff]  }
  0x37   :  { %v52_v53 = vld [vmem:[%s4616_s0 + $0x10] sm:$0xf]  ;;  %v53_v54 = vld [vmem:[%s4616_s0 + $0x14] sm:$0xf]  ;;  %v3877_v56 = vld [vmem:[#allocation2 + $0x1c0] sm:$0xff]  }
  0x38   :  { %2827 = vmatpush3.bf16.msra.mxu0 %v3504_v9  ;;  %2847 = vmatpush3.bf16.msra.mxu1 %v3505_v10  ;;  %v3881_v57 = vld [vmem:[#allocation2 + $0x188] sm:$0xff]   ;;  %v3893_v59 = vld [vmem:[#allocation2 + $0x190] sm:$0xff]   ;;  %v3901_v61 = vld [vmem:[#allocation2 + $0x198] sm:$0xff]  }
  0x39   :  { %2828 = vmatprep.subr.bf16.mxu0 %v3728_v0  ;;  %2848 = vmatprep.subr.bf16.mxu1 %v3728_v0  ;;  %v3885_v58 = vld [vmem:[#allocation2 + $0x1c8] sm:$0xff]   ;;  %v3897_v60 = vld [vmem:[#allocation2 + $0x1d0] sm:$0xff]   ;;  %v3905_v62 = vld [vmem:[#allocation2 + $0x1d8] sm:$0xff]  }
  0x3a   :  { %v3909_v63 = vld [vmem:[#allocation2 + $0x1a0] sm:$0xff]   ;;  %v3917_v2 = vld [vmem:[#allocation2 + $0x1a8] sm:$0xff]   ;;  %v3925_v4 = vld [vmem:[#allocation2 + $0x1b0] sm:$0xff]  }
  0x3b   :  { %v3913_v1 = vld [vmem:[#allocation2 + $0x1e0] sm:$0xff]   ;;  %v3921_v3 = vld [vmem:[#allocation2 + $0x1e8] sm:$0xff]   ;;  %v3929_v5 = vld [vmem:[#allocation2 + $0x1f0] sm:$0xff]  }
  0x3c   :  { %2829 = vmatpush3.bf16.msra.mxu0 %v3506_v11  ;;  %2849 = vmatpush3.bf16.msra.mxu1 %v3507_v12  ;;  %v3933_v6 = vld [vmem:[#allocation2 + $0x1b8] sm:$0xff]   ;;  %v3947_v10 = vld [vmem:[#allocation4] sm:$0xff]   ;;  %v3955_v12 = vld [vmem:[#allocation4 + $0x8] sm:$0xff]  }
  0x3d   :  { %2830 = vmatprep.subr.bf16.mxu0 %v3728_v0  ;;  %2850 = vmatprep.subr.bf16.mxu1 %v3728_v0  ;;  %v3937_v7 = vld [vmem:[#allocation2 + $0x1f8] sm:$0xff]   ;;  %v3951_v11 = vld [vmem:[#allocation4 + $0x40] sm:$0xff]  }
  0x3e   :  { %v54_v8 = vld [vmem:[%s4616_s0 + $0x18] sm:$0xf]  ;;  %v55_v9 = vld [vmem:[%s4616_s0 + $0x1c] sm:$0xf] }
  0x40   :  { %2831 = vmatpush3.bf16.msra.mxu0 %v3508_v13  ;;  %2851 = vmatpush3.bf16.msra.mxu1 %v3509_v14  ;;  %v3959_v13 = vld [vmem:[#allocation4 + $0x48] sm:$0xff]   ;;  %v3967_v14 = vld [vmem:[#allocation4 + $0x10] sm:$0xff]  }
  0x41   :  { %2832 = vmatprep.subr.bf16.mxu0 %v3728_v0  ;;  %2852 = vmatprep.subr.bf16.mxu1 %v3728_v0 }
  0x44   :  { %2833 = vmatpush3.bf16.msra.mxu0 %v3510_v15  ;;  %2853 = vmatpush3.bf16.msra.mxu1 %v3511_v16  ;;  %v3971_v15 = vld [vmem:[#allocation4 + $0x50] sm:$0xff]   ;;  %v3975_v16 = vld [vmem:[#allocation4 + $0x18] sm:$0xff]  }
  0x45   :  { %2858 = vmatprep.subr.bf16.mxu0 %v3728_v0  ;;  %2878 = vmatprep.subr.bf16.mxu1 %v3728_v0 }
  0x47   :  { %2835 = vmatmul.mubr.bf16.vlgmr.msra.gmra.mrb[0].mxu0 %v48_v17  ;;  %2855 = vmatmul.mubr.bf16.vlgmr.msra.gmra.mrb[0].mxu1 %v49_v18  ;;  %v3979_v17 = vld [vmem:[#allocation4 + $0x58] sm:$0xff]   ;;  %v3983_v18 = vld [vmem:[#allocation4 + $0x20] sm:$0xff]  }
  0x48   :  { %2859 = vmatpush3.bf16.msra.mxu0 %v3512_v19  ;;  %2879 = vmatpush3.bf16.msra.mxu1 %v3513_v20  ;;  %v3987_v19 = vld [vmem:[#allocation4 + $0x60] sm:$0xff]   ;;  %v3991_v20 = vld [vmem:[#allocation4 + $0x28] sm:$0xff]  }
  0x49   :  { %2860 = vmatprep.subr.bf16.mxu0 %v3728_v0  ;;  %2880 = vmatprep.subr.bf16.mxu1 %v3728_v0 }
  0x4a   :  { %2874 = vmatprep.mubr.msk.bf16.mxu0 %vm3729_vm0, %v3728_v0  ;;  %2894 = vmatprep.mubr.msk.bf16.mxu1 %vm3729_vm0, %v3728_v0 }
  0x4c   :  { %2861 = vmatpush3.bf16.msra.mxu0 %v3514_v21  ;;  %2881 = vmatpush3.bf16.msra.mxu1 %v3515_v22  ;;  %v3995_v21 = vld [vmem:[#allocation4 + $0x68] sm:$0xff]   ;;  %v3999_v22 = vld [vmem:[#allocation4 + $0x30] sm:$0xff]  }
  0x4d   :  { %2862 = vmatprep.subr.bf16.mxu0 %v3728_v0  ;;  %2882 = vmatprep.subr.bf16.mxu1 %v3728_v0 }
  0x50   :  { %2863 = vmatpush3.bf16.msra.mxu0 %v3516_v23  ;;  %2883 = vmatpush3.bf16.msra.mxu1 %v3517_v24  ;;  %v4003_v23 = vld [vmem:[#allocation4 + $0x70] sm:$0xff]   ;;  %v4007_v24 = vld [vmem:[#allocation4 + $0x38] sm:$0xff]  }
  0x51   :  { %2864 = vmatprep.subr.bf16.mxu0 %v3728_v0  ;;  %2884 = vmatprep.subr.bf16.mxu1 %v3728_v0 }
  0x54   :  { %2865 = vmatpush3.bf16.msra.mxu0 %v3518_v25  ;;  %2885 = vmatpush3.bf16.msra.mxu1 %v3519_v26  ;;  %v4011_v25 = vld [vmem:[#allocation4 + $0x78] sm:$0xff]   ;;  %v4018_v26 = vld [vmem:[%s4617_s1] sm:$0xf] }
  0x55   :  { %2866 = vmatprep.subr.bf16.mxu0 %v3728_v0  ;;  %2886 = vmatprep.subr.bf16.mxu1 %v3728_v0 }
  0x58   :  { %2867 = vmatpush3.bf16.msra.mxu0 %v3520_v27  ;;  %2887 = vmatpush3.bf16.msra.mxu1 %v3521_v28  ;;  %v4020_v27 = vld [vmem:[#allocation4 + $0x80] sm:$0xff]  }
  0x59   :  { %2868 = vmatprep.subr.bf16.mxu0 %v3728_v0  ;;  %2888 = vmatprep.subr.bf16.mxu1 %v3728_v0  ;;  %v4026_v28 = vld [vmem:[%s4617_s1 + $0x4] sm:$0xf] }
  0x5c   :  { %2869 = vmatpush3.bf16.msra.mxu0 %v3522_v29  ;;  %2889 = vmatpush3.bf16.msra.mxu1 %v3523_v30  ;;  %v4029_v29 = vld [vmem:[#allocation4 + $0xc0] sm:$0xff]   ;;  %v4035_v30 = vld [vmem:[#allocation4 + $0x88] sm:$0xff]  }
  0x5d   :  { %2870 = vmatprep.subr.bf16.mxu0 %v3728_v0  ;;  %2890 = vmatprep.subr.bf16.mxu1 %v3728_v0 }
  0x60   :  { %2871 = vmatpush3.bf16.msra.mxu0 %v3524_v31  ;;  %2891 = vmatpush3.bf16.msra.mxu1 %v3525_v32  ;;  %v4039_v31 = vld [vmem:[#allocation4 + $0xc8] sm:$0xff]   ;;  %v4047_v32 = vld [vmem:[#allocation4 + $0x90] sm:$0xff]  }
  0x61   :  { %2872 = vmatprep.subr.bf16.mxu0 %v3728_v0  ;;  %2892 = vmatprep.subr.bf16.mxu1 %v3728_v0 }
  0x64   :  { %2873 = vmatpush3.bf16.msra.mxu0 %v3526_v33  ;;  %2893 = vmatpush3.bf16.msra.mxu1 %v3527_v34  ;;  %v4051_v33 = vld [vmem:[#allocation4 + $0xd0] sm:$0xff]   ;;  %v4055_v34 = vld [vmem:[#allocation4 + $0x98] sm:$0xff]  }
  0x65   :  { %2898 = vmatprep.subr.bf16.mxu0 %v3728_v0  ;;  %2918 = vmatprep.subr.bf16.mxu1 %v3728_v0  ;;  %4665 = vst [vmem:[#allocation8_spill] sm:$0xff] %v4051_v33  ;;  %4666 = vst [vmem:[#allocation9_spill] sm:$0xff] %v4055_v34 }
  0x67   :  { %2875 = vmatmul.mubr.bf16.vlgmr.msra.gmra.mrb[4].mxu0 %v50_v35  ;;  %2895 = vmatmul.mubr.bf16.vlgmr.msra.gmra.mrb[4].mxu1 %v51_v36  ;;  %v4059_v35 = vld [vmem:[#allocation4 + $0xd8] sm:$0xff]   ;;  %v4063_v36 = vld [vmem:[#allocation4 + $0xa0] sm:$0xff]  }
  0x68   :  { %2899 = vmatpush3.bf16.msra.mxu0 %v3528_v37  ;;  %2919 = vmatpush3.bf16.msra.mxu1 %v3529_v38  ;;  %4667 = vst [vmem:[#allocation10_spill] sm:$0xff] %v4059_v35  ;;  %4668 = vst [vmem:[#allocation11_spill] sm:$0xff] %v4063_v36  ;;  %v4067_v37 = vld [vmem:[#allocation4 + $0xe0] sm:$0xff]   ;;  %v4071_v38 = vld [vmem:[#allocation4 + $0xa8] sm:$0xff]  }
  0x69   :  { %2900 = vmatprep.subr.bf16.mxu0 %v3728_v0  ;;  %2920 = vmatprep.subr.bf16.mxu1 %v3728_v0  ;;  %4669 = vst [vmem:[#allocation12_spill] sm:$0xff] %v4067_v37  ;;  %4670 = vst [vmem:[#allocation13_spill] sm:$0xff] %v4071_v38 }
  0x6a   :  { %2914 = vmatprep.mubr.msk.bf16.mxu0 %vm3729_vm0, %v3728_v0  ;;  %2934 = vmatprep.mubr.msk.bf16.mxu1 %vm3729_vm0, %v3728_v0 }
  0x6c   :  { %2901 = vmatpush3.bf16.msra.mxu0 %v3530_v39  ;;  %2921 = vmatpush3.bf16.msra.mxu1 %v3531_v40  ;;  %v4075_v39 = vld [vmem:[#allocation4 + $0xe8] sm:$0xff]   ;;  %v4079_v40 = vld [vmem:[#allocation4 + $0xb0] sm:$0xff]  }
  0x6d   :  { %2902 = vmatprep.subr.bf16.mxu0 %v3728_v0  ;;  %2922 = vmatprep.subr.bf16.mxu1 %v3728_v0  ;;  %4671 = vst [vmem:[#allocation14_spill] sm:$0xff] %v4075_v39  ;;  %4672 = vst [vmem:[#allocation15_spill] sm:$0xff] %v4079_v40 }
  0x70   :  { %2903 = vmatpush3.bf16.msra.mxu0 %v3532_v41  ;;  %2923 = vmatpush3.bf16.msra.mxu1 %v3533_v42  ;;  %v4083_v41 = vld [vmem:[#allocation4 + $0xf0] sm:$0xff]   ;;  %v4087_v42 = vld [vmem:[#allocation4 + $0xb8] sm:$0xff]  }
  0x71   :  { %2904 = vmatprep.subr.bf16.mxu0 %v3728_v0  ;;  %2924 = vmatprep.subr.bf16.mxu1 %v3728_v0  ;;  %4673 = vst [vmem:[#allocation16_spill] sm:$0xff] %v4083_v41  ;;  %4674 = vst [vmem:[#allocation17_spill] sm:$0xff] %v4087_v42 }
  0x74   :  { %2905 = vmatpush3.bf16.msra.mxu0 %v3534_v43  ;;  %2925 = vmatpush3.bf16.msra.mxu1 %v3535_v44  ;;  %v4091_v43 = vld [vmem:[#allocation4 + $0xf8] sm:$0xff]   ;;  %v4098_v44 = vld [vmem:[%s4617_s1 + $0x8] sm:$0xf] }
  0x75   :  { %2906 = vmatprep.subr.bf16.mxu0 %v3728_v0  ;;  %2926 = vmatprep.subr.bf16.mxu1 %v3728_v0  ;;  %4675 = vst [vmem:[#allocation18_spill] sm:$0xff] %v4091_v43 }
  0x78   :  { %2907 = vmatpush3.bf16.msra.mxu0 %v3536_v45  ;;  %2927 = vmatpush3.bf16.msra.mxu1 %v3537_v46  ;;  %v4100_v45 = vld [vmem:[#allocation4 + $0x100] sm:$0xff]   ;;  %v4106_v46 = vld [vmem:[%s4617_s1 + $0xc] sm:$0xf] }
  0x79   :  { %2908 = vmatprep.subr.bf16.mxu0 %v3728_v0  ;;  %2928 = vmatprep.subr.bf16.mxu1 %v3728_v0  ;;  %4676 = vst [vmem:[#allocation19_spill] sm:$0xff] %v4100_v45 }
  0x7c   :  { %2909 = vmatpush3.bf16.msra.mxu0 %v3538_v47  ;;  %2929 = vmatpush3.bf16.msra.mxu1 %v3539_v48  ;;  %v4109_v47 = vld [vmem:[#allocation4 + $0x140] sm:$0xff]   ;;  %v4115_v48 = vld [vmem:[#allocation4 + $0x108] sm:$0xff]  }
  0x7d   :  { %2910 = vmatprep.subr.bf16.mxu0 %v3728_v0  ;;  %2930 = vmatprep.subr.bf16.mxu1 %v3728_v0  ;;  %4677 = vst [vmem:[#allocation20_spill] sm:$0xff] %v4109_v47  ;;  %4678 = vst [vmem:[#allocation21_spill] sm:$0xff] %v4115_v48 }
  0x80   :  { %2911 = vmatpush3.bf16.msra.mxu0 %v3852_v49  ;;  %2931 = vmatpush3.bf16.msra.mxu1 %v3855_v50 }
  0x81   :  { %2912 = vmatprep.subr.bf16.mxu0 %v3728_v0  ;;  %2932 = vmatprep.subr.bf16.mxu1 %v3728_v0 }
  0x84   :  { %2913 = vmatpush3.bf16.msra.mxu0 %v3859_v51  ;;  %2933 = vmatpush3.bf16.msra.mxu1 %v3863_v52 }
  0x85   :  { %2938 = vmatprep.subr.bf16.mxu0 %v3728_v0  ;;  %2958 = vmatprep.subr.bf16.mxu1 %v3728_v0 }
  0x87   :  { %2915 = vmatmul.mubr.bf16.vlgmr.msra.gmra.mrb[8].mxu0 %v52_v53  ;;  %2935 = vmatmul.mubr.bf16.vlgmr.msra.gmra.mrb[8].mxu1 %v53_v54  ;;  %v4119_v53 = vld [vmem:[#allocation4 + $0x148] sm:$0xff]   ;;  %v4127_v54 = vld [vmem:[#allocation4 + $0x110] sm:$0xff]  }
  0x88   :  { %2939 = vmatpush3.bf16.msra.mxu0 %v3873_v55  ;;  %2959 = vmatpush3.bf16.msra.mxu1 %v3877_v56  ;;  %4679 = vst [vmem:[#allocation22_spill] sm:$0xff] %v4119_v53  ;;  %4680 = vst [vmem:[#allocation23_spill] sm:$0xff] %v4127_v54 }
  0x89   :  { %2940 = vmatprep.subr.bf16.mxu0 %v3728_v0  ;;  %2960 = vmatprep.subr.bf16.mxu1 %v3728_v0 }
  0x8a   :  { %2954 = vmatprep.mubr.msk.bf16.mxu0 %vm3729_vm0, %v3728_v0  ;;  %2974 = vmatprep.mubr.msk.bf16.mxu1 %vm3729_vm0, %v3728_v0 }
  0x8c   :  { %2941 = vmatpush3.bf16.msra.mxu0 %v3881_v57  ;;  %2961 = vmatpush3.bf16.msra.mxu1 %v3885_v58 }
  0x8d   :  { %2942 = vmatprep.subr.bf16.mxu0 %v3728_v0  ;;  %2962 = vmatprep.subr.bf16.mxu1 %v3728_v0 }
  0x90   :  { %2943 = vmatpush3.bf16.msra.mxu0 %v3893_v59  ;;  %2963 = vmatpush3.bf16.msra.mxu1 %v3897_v60 }
  0x91   :  { %2944 = vmatprep.subr.bf16.mxu0 %v3728_v0  ;;  %2964 = vmatprep.subr.bf16.mxu1 %v3728_v0 }
  0x94   :  { %2945 = vmatpush3.bf16.msra.mxu0 %v3901_v61  ;;  %2965 = vmatpush3.bf16.msra.mxu1 %v3905_v62 }
  0x95   :  { %2946 = vmatprep.subr.bf16.mxu0 %v3728_v0  ;;  %2966 = vmatprep.subr.bf16.mxu1 %v3728_v0 }
  0x98   :  { %2947 = vmatpush3.bf16.msra.mxu0 %v3909_v63  ;;  %2967 = vmatpush3.bf16.msra.mxu1 %v3913_v1 }
  0x99   :  { %2948 = vmatprep.subr.bf16.mxu0 %v3728_v0  ;;  %2968 = vmatprep.subr.bf16.mxu1 %v3728_v0 }
  0x9c   :  { %2949 = vmatpush3.bf16.msra.mxu0 %v3917_v2  ;;  %2969 = vmatpush3.bf16.msra.mxu1 %v3921_v3 }
  0x9d   :  { %2950 = vmatprep.subr.bf16.mxu0 %v3728_v0  ;;  %2970 = vmatprep.subr.bf16.mxu1 %v3728_v0 }
  0xa0   :  { %2951 = vmatpush3.bf16.msra.mxu0 %v3925_v4  ;;  %2971 = vmatpush3.bf16.msra.mxu1 %v3929_v5 }
  0xa1   :  { %2952 = vmatprep.subr.bf16.mxu0 %v3728_v0  ;;  %2972 = vmatprep.subr.bf16.mxu1 %v3728_v0 }
  0xa4   :  { %2953 = vmatpush3.bf16.msra.mxu0 %v3933_v6  ;;  %2973 = vmatpush3.bf16.msra.mxu1 %v3937_v7 }
  0xa5   :  { %2978 = vmatprep.subr.bf16.mxu0 %v3728_v0  ;;  %2998 = vmatprep.subr.bf16.mxu1 %v3728_v0 }
  0xa7   :  { %2955 = vmatmul.mubr.bf16.vlgmr.msra.gmra.mrb[12].mxu0 %v54_v8  ;;  %2975 = vmatmul.mubr.bf16.vlgmr.msra.gmra.mrb[12].mxu1 %v55_v9  ;;  %v4131_v8 = vld [vmem:[#allocation4 + $0x150] sm:$0xff]   ;;  %v4135_v9 = vld [vmem:[#allocation4 + $0x118] sm:$0xff]  }
  0xa8   :  { %2979 = vmatpush3.bf16.msra.mxu0 %v3947_v10  ;;  %2999 = vmatpush3.bf16.msra.mxu1 %v3951_v11  ;;  %4681 = vst [vmem:[#allocation24_spill] sm:$0xff] %v4131_v8  ;;  %4682 = vst [vmem:[#allocation25_spill] sm:$0xff] %v4135_v9 }
  0xa9   :  { %2980 = vmatprep.subr.bf16.mxu0 %v3728_v0  ;;  %3000 = vmatprep.subr.bf16.mxu1 %v3728_v0 }
  0xaa   :  { %2994 = vmatprep.mubr.msk.bf16.mxu0 %vm3729_vm0, %v3728_v0  ;;  %3014 = vmatprep.mubr.msk.bf16.mxu1 %vm3729_vm0, %v3728_v0 }
  0xac   :  { %2981 = vmatpush3.bf16.msra.mxu0 %v3955_v12  ;;  %3001 = vmatpush3.bf16.msra.mxu1 %v3959_v13 }
  0xad   :  { %2982 = vmatprep.subr.bf16.mxu0 %v3728_v0  ;;  %3002 = vmatprep.subr.bf16.mxu1 %v3728_v0 }
  0xb0   :  { %2983 = vmatpush3.bf16.msra.mxu0 %v3967_v14  ;;  %3003 = vmatpush3.bf16.msra.mxu1 %v3971_v15 }
  0xb1   :  { %2984 = vmatprep.subr.bf16.mxu0 %v3728_v0  ;;  %3004 = vmatprep.subr.bf16.mxu1 %v3728_v0 }
  0xb4   :  { %2985 = vmatpush3.bf16.msra.mxu0 %v3975_v16  ;;  %3005 = vmatpush3.bf16.msra.mxu1 %v3979_v17 }
  0xb5   :  { %2986 = vmatprep.subr.bf16.mxu0 %v3728_v0  ;;  %3006 = vmatprep.subr.bf16.mxu1 %v3728_v0 }
  0xb8   :  { %2987 = vmatpush3.bf16.msra.mxu0 %v3983_v18  ;;  %3007 = vmatpush3.bf16.msra.mxu1 %v3987_v19 }
  0xb9   :  { %2988 = vmatprep.subr.bf16.mxu0 %v3728_v0  ;;  %3008 = vmatprep.subr.bf16.mxu1 %v3728_v0 }
  0xbc   :  { %2989 = vmatpush3.bf16.msra.mxu0 %v3991_v20  ;;  %3009 = vmatpush3.bf16.msra.mxu1 %v3995_v21 }
  0xbd   :  { %2990 = vmatprep.subr.bf16.mxu0 %v3728_v0  ;;  %3010 = vmatprep.subr.bf16.mxu1 %v3728_v0 }
  0xc0   :  { %2991 = vmatpush3.bf16.msra.mxu0 %v3999_v22  ;;  %3011 = vmatpush3.bf16.msra.mxu1 %v4003_v23 }
  0xc1   :  { %2992 = vmatprep.subr.bf16.mxu0 %v3728_v0  ;;  %3012 = vmatprep.subr.bf16.mxu1 %v3728_v0 }
  0xc4   :  { %2993 = vmatpush3.bf16.msra.mxu0 %v4007_v24  ;;  %3013 = vmatpush3.bf16.msra.mxu1 %v4011_v25 }
  0xc5   :  { %3018 = vmatprep.subr.bf16.mxu0 %v3728_v0  ;;  %3038 = vmatprep.subr.bf16.mxu1 %v3728_v0 }
  0xc7   :  { %2995 = vmatmul.mubr.bf16.vlgmr.msra.gmra.mrb[16].mxu0 %v4018_v26  ;;  %3015 = vmatmul.mubr.bf16.vlgmr.msra.gmra.mrb[16].mxu1 %v4026_v28 }
  0xc8   :  { %3019 = vmatpush3.bf16.msra.mxu0 %v4020_v27  ;;  %3039 = vmatpush3.bf16.msra.mxu1 %v4029_v29 }
  0xc9   :  { %3020 = vmatprep.subr.bf16.mxu0 %v3728_v0  ;;  %3040 = vmatprep.subr.bf16.mxu1 %v3728_v0 }
  0xca   :  { %3034 = vmatprep.mubr.msk.bf16.mxu0 %vm3729_vm0, %v3728_v0  ;;  %3054 = vmatprep.mubr.msk.bf16.mxu1 %vm3729_vm0, %v3728_v0 }
  0xcc   :  { %3021 = vmatpush3.bf16.msra.mxu0 %v4035_v30  ;;  %3041 = vmatpush3.bf16.msra.mxu1 %v4039_v31 }
  0xcd   :  { %3022 = vmatprep.subr.bf16.mxu0 %v3728_v0  ;;  %3042 = vmatprep.subr.bf16.mxu1 %v3728_v0 }
  0xd0   :  { %3023 = vmatpush3.bf16.msra.mxu0 %v4047_v32  ;;  %3043 = vmatpush3.bf16.msra.mxu1 %v4051_v33  ;;  %v3637_v33 = vld [vmem:[#allocation2 + $0x70] sm:$0xff]  }
  0xd1   :  { %3024 = vmatprep.subr.bf16.mxu0 %v3728_v0  ;;  %3044 = vmatprep.subr.bf16.mxu1 %v3728_v0 }
  0xd4   :  { %3025 = vmatpush3.bf16.msra.mxu0 %v4055_v34  ;;  %3045 = vmatpush3.bf16.msra.mxu1 %v4059_v35  ;;  %v3635_v35 = vld [vmem:[#allocation2 + $0x68] sm:$0xff]  }
  0xd5   :  { %3026 = vmatprep.subr.bf16.mxu0 %v3728_v0  ;;  %3046 = vmatprep.subr.bf16.mxu1 %v3728_v0 }
  0xd8   :  { %3027 = vmatpush3.bf16.msra.mxu0 %v4063_v36  ;;  %3047 = vmatpush3.bf16.msra.mxu1 %v4067_v37 }
  0xd9   :  { %3028 = vmatprep.subr.bf16.mxu0 %v3728_v0  ;;  %3048 = vmatprep.subr.bf16.mxu1 %v3728_v0 }
  0xdc   :  { %3029 = vmatpush3.bf16.msra.mxu0 %v4071_v38  ;;  %3049 = vmatpush3.bf16.msra.mxu1 %v4075_v39  ;;  %v4247_v38 = vld [vmem:[#allocation4 + $0x1f0] sm:$0xff]  }
  0xdd   :  { %3030 = vmatprep.subr.bf16.mxu0 %v3728_v0  ;;  %3050 = vmatprep.subr.bf16.mxu1 %v3728_v0  ;;  %4705 = vst [vmem:[#allocation48_spill] sm:$0xff] %v4247_v38 }
  0xe0   :  { %3031 = vmatpush3.bf16.msra.mxu0 %v4079_v40  ;;  %3051 = vmatpush3.bf16.msra.mxu1 %v4083_v41 }
  0xe1   :  { %3032 = vmatprep.subr.bf16.mxu0 %v3728_v0  ;;  %3052 = vmatprep.subr.bf16.mxu1 %v3728_v0 }
  0xe4   :  { %3033 = vmatpush3.bf16.msra.mxu0 %v4087_v42  ;;  %3053 = vmatpush3.bf16.msra.mxu1 %v4091_v43  ;;  %v4219_v43 = vld [vmem:[#allocation4 + $0x1d8] sm:$0xff]  }
  0xe5   :  { %3058 = vmatprep.subr.bf16.mxu0 %v3728_v0  ;;  %3078 = vmatprep.subr.bf16.mxu1 %v3728_v0  ;;  %4699 = vst [vmem:[#allocation42_spill] sm:$0xff] %v4219_v43 }
  0xe7   :  { %3035 = vmatmul.mubr.bf16.vlgmr.msra.gmra.mrb[20].mxu0 %v4098_v44  ;;  %3055 = vmatmul.mubr.bf16.vlgmr.msra.gmra.mrb[20].mxu1 %v4106_v46 }
  0xe8   :  { %3059 = vmatpush3.bf16.msra.mxu0 %v4100_v45  ;;  %3079 = vmatpush3.bf16.msra.mxu1 %v4109_v47  ;;  %v4139_v47 = vld [vmem:[#allocation4 + $0x158] sm:$0xff]   ;;  %v4207_v45 = vld [vmem:[#allocation4 + $0x190] sm:$0xff]  }
  0xe9   :  { %3060 = vmatprep.subr.bf16.mxu0 %v3728_v0  ;;  %3080 = vmatprep.subr.bf16.mxu1 %v3728_v0  ;;  %4683 = vst [vmem:[#allocation26_spill] sm:$0xff] %v4139_v47  ;;  %4696 = vst [vmem:[#allocation39_spill] sm:$0xff] %v4207_v45 }
  0xea   :  { %3074 = vmatprep.mubr.msk.bf16.mxu0 %vm3729_vm0, %v3728_v0  ;;  %3094 = vmatprep.mubr.msk.bf16.mxu1 %vm3729_vm0, %v3728_v0 }
  0xec   :  { %3061 = vmatpush3.bf16.msra.mxu0 %v4115_v48  ;;  %3081 = vmatpush3.bf16.msra.mxu1 %v4119_v53  ;;  %v4143_v53 = vld [vmem:[#allocation4 + $0x120] sm:$0xff]  }
  0xed   :  { %3062 = vmatprep.subr.bf16.mxu0 %v3728_v0  ;;  %3082 = vmatprep.subr.bf16.mxu1 %v3728_v0  ;;  %4684 = vst [vmem:[#allocation27_spill] sm:$0xff] %v4143_v53  ;;  %v4147_v48 = vld [vmem:[#allocation4 + $0x160] sm:$0xff]  }
  0xee   :  { %4685 = vst [vmem:[#allocation28_spill] sm:$0xff] %v4147_v48 }
  0xf0   :  { %3063 = vmatpush3.bf16.msra.mxu0 %v4127_v54  ;;  %3083 = vmatpush3.bf16.msra.mxu1 %v4131_v8  ;;  %v4151_v8 = vld [vmem:[#allocation4 + $0x128] sm:$0xff]  }
  0xf1   :  { %3064 = vmatprep.subr.bf16.mxu0 %v3728_v0  ;;  %3084 = vmatprep.subr.bf16.mxu1 %v3728_v0  ;;  %4686 = vst [vmem:[#allocation29_spill] sm:$0xff] %v4151_v8  ;;  %v4155_v54 = vld [vmem:[#allocation4 + $0x168] sm:$0xff]  }
  0xf2   :  { %4687 = vst [vmem:[#allocation30_spill] sm:$0xff] %v4155_v54 }
  0xf4   :  { %3065 = vmatpush3.bf16.msra.mxu0 %v4135_v9  ;;  %3085 = vmatpush3.bf16.msra.mxu1 %v4139_v47  ;;  %v4159_v47 = vld [vmem:[#allocation4 + $0x130] sm:$0xff]  }
  0xf5   :  { %3066 = vmatprep.subr.bf16.mxu0 %v3728_v0  ;;  %3086 = vmatprep.subr.bf16.mxu1 %v3728_v0  ;;  %4688 = vst [vmem:[#allocation31_spill] sm:$0xff] %v4159_v47  ;;  %v4163_v9 = vld [vmem:[#allocation4 + $0x170] sm:$0xff]  }
  0xf6   :  { %4689 = vst [vmem:[#allocation32_spill] sm:$0xff] %v4163_v9 }
  0xf8   :  { %3067 = vmatpush3.bf16.msra.mxu0 %v4143_v53  ;;  %3087 = vmatpush3.bf16.msra.mxu1 %v4147_v48  ;;  %v4167_v48 = vld [vmem:[#allocation4 + $0x138] sm:$0xff]  }
  0xf9   :  { %3068 = vmatprep.subr.bf16.mxu0 %v3728_v0  ;;  %3088 = vmatprep.subr.bf16.mxu1 %v3728_v0  ;;  %4690 = vst [vmem:[#allocation33_spill] sm:$0xff] %v4167_v48  ;;  %v4171_v53 = vld [vmem:[#allocation4 + $0x178] sm:$0xff]  }
  0xfa   :  { %4691 = vst [vmem:[#allocation34_spill] sm:$0xff] %v4171_v53 }
  0xfc   :  { %3069 = vmatpush3.bf16.msra.mxu0 %v4151_v8  ;;  %3089 = vmatpush3.bf16.msra.mxu1 %v4155_v54  ;;  %v4178_v54 = vld [vmem:[%s4617_s1 + $0x10] sm:$0xf]  ;;  %v4180_v8 = vld [vmem:[#allocation4 + $0x180] sm:$0xff]  }
  0xfd   :  { %3070 = vmatprep.subr.bf16.mxu0 %v3728_v0  ;;  %3090 = vmatprep.subr.bf16.mxu1 %v3728_v0  ;;  %4692 = vst [vmem:[#allocation35_spill] sm:$0xff] %v4180_v8 }
 0x100   :  { %3071 = vmatpush3.bf16.msra.mxu0 %v4159_v47  ;;  %3091 = vmatpush3.bf16.msra.mxu1 %v4163_v9  ;;  %v4186_v9 = vld [vmem:[%s4617_s1 + $0x14] sm:$0xf]  ;;  %v4189_v47 = vld [vmem:[#allocation4 + $0x1c0] sm:$0xff]  }
 0x101   :  { %3072 = vmatprep.subr.bf16.mxu0 %v3728_v0  ;;  %3092 = vmatprep.subr.bf16.mxu1 %v3728_v0  ;;  %4693 = vst [vmem:[#allocation36_spill] sm:$0xff] %v4189_v47 }
 0x104   :  { %3073 = vmatpush3.bf16.msra.mxu0 %v4167_v48  ;;  %3093 = vmatpush3.bf16.msra.mxu1 %v4171_v53  ;;  %v4195_v48 = vld [vmem:[#allocation4 + $0x188] sm:$0xff]  }
 0x105   :  { %3098 = vmatprep.subr.bf16.mxu0 %v3728_v0  ;;  %3118 = vmatprep.subr.bf16.mxu1 %v3728_v0  ;;  %4694 = vst [vmem:[#allocation37_spill] sm:$0xff] %v4195_v48  ;;  %v4199_v53 = vld [vmem:[#allocation4 + $0x1c8] sm:$0xff]  }
 0x106   :  { %4695 = vst [vmem:[#allocation38_spill] sm:$0xff] %v4199_v53 }
 0x107   :  { %3075 = vmatmul.mubr.bf16.vlgmr.msra.gmra.mrb[24].mxu0 %v4178_v54  ;;  %3095 = vmatmul.mubr.bf16.vlgmr.msra.gmra.mrb[24].mxu1 %v4186_v9 }
 0x108   :  { %3099 = vmatpush3.bf16.msra.mxu0 %v4180_v8  ;;  %3119 = vmatpush3.bf16.msra.mxu1 %v4189_v47  ;;  %v4211_v47 = vld [vmem:[#allocation4 + $0x1d0] sm:$0xff]   ;;  %v4215_v8 = vld [vmem:[#allocation4 + $0x198] sm:$0xff]  }
 0x109   :  { %3100 = vmatprep.subr.bf16.mxu0 %v3728_v0  ;;  %3120 = vmatprep.subr.bf16.mxu1 %v3728_v0  ;;  %4697 = vst [vmem:[#allocation40_spill] sm:$0xff] %v4211_v47  ;;  %4698 = vst [vmem:[#allocation41_spill] sm:$0xff] %v4215_v8 }
 0x10a   :  { %3114 = vmatprep.mubr.msk.bf16.mxu0 %vm3729_vm0, %v3728_v0  ;;  %3134 = vmatprep.mubr.msk.bf16.mxu1 %vm3729_vm0, %v3728_v0 }
 0x10c   :  { %3101 = vmatpush3.bf16.msra.mxu0 %v4195_v48  ;;  %3121 = vmatpush3.bf16.msra.mxu1 %v4199_v53  ;;  %v4223_v53 = vld [vmem:[#allocation4 + $0x1a0] sm:$0xff]  }
 0x10d   :  { %3102 = vmatprep.subr.bf16.mxu0 %v3728_v0  ;;  %3122 = vmatprep.subr.bf16.mxu1 %v3728_v0  ;;  %4700 = vst [vmem:[#allocation43_spill] sm:$0xff] %v4223_v53  ;;  %v4227_v48 = vld [vmem:[#allocation4 + $0x1e0] sm:$0xff]  }
 0x10e   :  { %4701 = vst [vmem:[#allocation44_spill] sm:$0xff] %v4227_v48 }
 0x110   :  { %3103 = vmatpush3.bf16.msra.mxu0 %v4207_v45  ;;  %3123 = vmatpush3.bf16.msra.mxu1 %v4211_v47  ;;  %v4231_v47 = vld [vmem:[#allocation4 + $0x1a8] sm:$0xff]  }
 0x111   :  { %3104 = vmatprep.subr.bf16.mxu0 %v3728_v0  ;;  %3124 = vmatprep.subr.bf16.mxu1 %v3728_v0  ;;  %4702 = vst [vmem:[#allocation45_spill] sm:$0xff] %v4231_v47  ;;  %v4235_v45 = vld [vmem:[#allocation4 + $0x1e8] sm:$0xff]  }
 0x112   :  { %4703 = vst [vmem:[#allocation46_spill] sm:$0xff] %v4235_v45 }
 0x114   :  { %3105 = vmatpush3.bf16.msra.mxu0 %v4215_v8  ;;  %3125 = vmatpush3.bf16.msra.mxu1 %v4219_v43 }
 0x115   :  { %3106 = vmatprep.subr.bf16.mxu0 %v3728_v0  ;;  %3126 = vmatprep.subr.bf16.mxu1 %v3728_v0 }
 0x118   :  { %3107 = vmatpush3.bf16.msra.mxu0 %v4223_v53  ;;  %3127 = vmatpush3.bf16.msra.mxu1 %v4227_v48  ;;  %v4243_v53 = vld [vmem:[#allocation4 + $0x1b0] sm:$0xff]  }
 0x119   :  { %3108 = vmatprep.subr.bf16.mxu0 %v3728_v0  ;;  %3128 = vmatprep.subr.bf16.mxu1 %v3728_v0  ;;  %4704 = vst [vmem:[#allocation47_spill] sm:$0xff] %v4243_v53 }
 0x11a   :  { %v4237_v8 = vpop.f32.mrb[0].mxu0  ;;  %v4240_v43 = vpop.f32.mrb[0].mxu1 }
 0x11b   :  { %v2836_v42 = vpop.f32.mrb[1].mxu0  ;;  %v2856_v41 = vpop.f32.mrb[1].mxu1 }
 0x11c   :  { %v405_v40 = vpop.f32.mrb[2].mxu0  ;;  %3109 = vmatpush3.bf16.msra.mxu0 %v4231_v47  ;;  %v493_v39 = vpop.f32.mrb[2].mxu1  ;;  %3129 = vmatpush3.bf16.msra.mxu1 %v4235_v45  ;;  %v4251_v42 = vld [vmem:[#allocation4 + $0x1b8] sm:$0xff]   ;;  %v3624_v41 = vld [vmem:[#allocation2] sm:$0xff]  }
 0x11d   :  { %v2837_v48 = vpop.f32.mrb[3].mxu0  ;;  %3110 = vmatprep.subr.bf16.mxu0 %v3728_v0  ;;  %v2857_v37 = vpop.f32.mrb[3].mxu1  ;;  %3130 = vmatprep.subr.bf16.mxu1 %v3728_v0  ;;  %4706 = vst [vmem:[#allocation49_spill] sm:$0xff] %v4251_v42  ;;  %v4255_v40 = vld [vmem:[#allocation4 + $0x1f8] sm:$0xff]  }
 0x11e   :  { %4707 = vst [vmem:[#allocation50_spill] sm:$0xff] %v4255_v40  ;;  %v4262_v37 = vld [vmem:[%s4617_s1 + $0x18] sm:$0xf]  ;;  %v4268_v39 = vld [vmem:[%s4617_s1 + $0x1c] sm:$0xf]  ;;  %v3625_v48 = vld [vmem:[#allocation2 + $0x40] sm:$0xff]  }
 0x120   :  { %3111 = vmatpush3.bf16.msra.mxu0 %v4243_v53  ;;  %3131 = vmatpush3.bf16.msra.mxu1 %v4247_v38  ;;  %v3630_v38 = vld [vmem:[#allocation2 + $0x18] sm:$0xff]  }
 0x121   :  { %3112 = vmatprep.subr.bf16.mxu0 %v3728_v0  ;;  %3132 = vmatprep.subr.bf16.mxu1 %v3728_v0  ;;  %v3631_v53 = vld [vmem:[#allocation2 + $0x58] sm:$0xff]  }
 0x124   :  { %3113 = vmatpush3.bf16.msra.mxu0 %v4251_v42  ;;  %3133 = vmatpush3.bf16.msra.mxu1 %v4255_v40  ;;  %v3626_v40 = vld [vmem:[#allocation2 + $0x8] sm:$0xff]  }
 0x125   :  { %3138 = vmatprep.subr.bf16.mxu0 %v3728_v0  ;;  %3158 = vmatprep.subr.bf16.mxu1 %v3728_v0  ;;  %v3627_v42 = vld [vmem:[#allocation2 + $0x48] sm:$0xff]  }
 0x127   :  { %3115 = vmatmul.mubr.bf16.vlgmr.msra.gmra.mrb[28].mxu0 %v4262_v37  ;;  %3135 = vmatmul.mubr.bf16.vlgmr.msra.gmra.mrb[28].mxu1 %v4268_v39 }
 0x128   :  { %3139 = vmatpush3.bf16.msra.mxu0 %v3624_v41  ;;  %3159 = vmatpush3.bf16.msra.mxu1 %v3625_v48  ;;  %v3628_v41 = vld [vmem:[#allocation2 + $0x10] sm:$0xff]  }
 0x129   :  { %3140 = vmatprep.subr.bf16.mxu0 %v3728_v0  ;;  %3160 = vmatprep.subr.bf16.mxu1 %v3728_v0  ;;  %v3629_v48 = vld [vmem:[#allocation2 + $0x50] sm:$0xff]  }
 0x12a   :  { %3154 = vmatprep.mubr.msk.bf16.mxu0 %vm3729_vm0, %v3728_v0  ;;  %3174 = vmatprep.mubr.msk.bf16.mxu1 %vm3729_vm0, %v3728_v0 }
 0x12c   :  { %3141 = vmatpush3.bf16.msra.mxu0 %v3626_v40  ;;  %3161 = vmatpush3.bf16.msra.mxu1 %v3627_v42  ;;  %v3632_v42 = vld [vmem:[#allocation2 + $0x20] sm:$0xff]  }
 0x12d   :  { %3142 = vmatprep.subr.bf16.mxu0 %v3728_v0  ;;  %3162 = vmatprep.subr.bf16.mxu1 %v3728_v0  ;;  %v3633_v40 = vld [vmem:[#allocation2 + $0x60] sm:$0xff]  }
 0x130   :  { %3143 = vmatpush3.bf16.msra.mxu0 %v3628_v41  ;;  %3163 = vmatpush3.bf16.msra.mxu1 %v3629_v48 }
 0x131   :  { %3144 = vmatprep.subr.bf16.mxu0 %v3728_v0  ;;  %3164 = vmatprep.subr.bf16.mxu1 %v3728_v0 }
 0x134   :  { %3145 = vmatpush3.bf16.msra.mxu0 %v3630_v38  ;;  %3165 = vmatpush3.bf16.msra.mxu1 %v3631_v53  ;;  %v3634_v53 = vld [vmem:[#allocation2 + $0x28] sm:$0xff]  }
 0x135   :  { %3146 = vmatprep.subr.bf16.mxu0 %v3728_v0  ;;  %3166 = vmatprep.subr.bf16.mxu1 %v3728_v0 }
 0x138   :  { %3147 = vmatpush3.bf16.msra.mxu0 %v3632_v42  ;;  %3167 = vmatpush3.bf16.msra.mxu1 %v3633_v40  ;;  %v3636_v40 = vld [vmem:[#allocation2 + $0x30] sm:$0xff]  }
 0x139   :  { %3148 = vmatprep.subr.bf16.mxu0 %v3728_v0  ;;  %3168 = vmatprep.subr.bf16.mxu1 %v3728_v0 }
 0x13a   :  { %v4287_v41 = vpop.f32.mrb[4].mxu0  ;;  %v4290_v48 = vpop.f32.mrb[4].mxu1 }
 0x13b   :  { %v2876_v45 = vpop.f32.mrb[5].mxu0  ;;  %v2896_v38 = vpop.f32.mrb[5].mxu1 }
 0x13c   :  { %v581_v47 = vpop.f32.mrb[6].mxu0  ;;  %3149 = vmatpush3.bf16.msra.mxu0 %v3634_v53  ;;  %v669_v36 = vpop.f32.mrb[6].mxu1  ;;  %3169 = vmatpush3.bf16.msra.mxu1 %v3635_v35  ;;  %v3638_v45 = vld [vmem:[#allocation2 + $0x38] sm:$0xff]   ;;  %v3641_v35 = vld [vmem:[#allocation2 + $0xc0] sm:$0xff]  }
 0x13d   :  { %v2877_v34 = vpop.f32.mrb[7].mxu0  ;;  %3150 = vmatprep.subr.bf16.mxu0 %v3728_v0  ;;  %v2897_v42 = vpop.f32.mrb[7].mxu1  ;;  %3170 = vmatprep.subr.bf16.mxu1 %v3728_v0  ;;  %v3639_v47 = vld [vmem:[#allocation2 + $0x78] sm:$0xff]   ;;  %v3643_v36 = vld [vmem:[#allocation2 + $0xc8] sm:$0xff]  }
 0x13e   :  { %v3640_v34 = vld [vmem:[#allocation2 + $0x80] sm:$0xff]   ;;  %v3646_v38 = vld [vmem:[#allocation2 + $0x98] sm:$0xff]  }
 0x13f   :  { %v3647_v53 = vld [vmem:[#allocation2 + $0xd8] sm:$0xff]   ;;  %v3648_v42 = vld [vmem:[#allocation2 + $0xa0] sm:$0xff]  }
 0x140   :  { %3151 = vmatpush3.bf16.msra.mxu0 %v3636_v40  ;;  %3171 = vmatpush3.bf16.msra.mxu1 %v3637_v33  ;;  %v3642_v33 = vld [vmem:[#allocation2 + $0x88] sm:$0xff]   ;;  %v3649_v40 = vld [vmem:[#allocation2 + $0xe0] sm:$0xff]  }
 0x141   :  { %3152 = vmatprep.subr.bf16.mxu0 %v3728_v0  ;;  %3172 = vmatprep.subr.bf16.mxu1 %v3728_v0 }
 0x144   :  { %3153 = vmatpush3.bf16.msra.mxu0 %v3638_v45  ;;  %3173 = vmatpush3.bf16.msra.mxu1 %v3639_v47 }
 0x145   :  { %3178 = vmatprep.subr.bf16.mxu0 %v3728_v0  ;;  %3198 = vmatprep.subr.bf16.mxu1 %v3728_v0 }
 0x147   :  { %3155 = vmatmul.mubr.bf16.vlgmr.msra.gmra.mrb[32].mxu0 %v4018_v26  ;;  %3175 = vmatmul.mubr.bf16.vlgmr.msra.gmra.mrb[32].mxu1 %v4026_v28  ;;  %v3644_v26 = vld [vmem:[#allocation2 + $0x90] sm:$0xff]  }
 0x148   :  { %3179 = vmatpush3.bf16.msra.mxu0 %v3640_v34  ;;  %3199 = vmatpush3.bf16.msra.mxu1 %v3641_v35  ;;  %v3645_v28 = vld [vmem:[#allocation2 + $0xd0] sm:$0xff]  }
 0x149   :  { %3180 = vmatprep.subr.bf16.mxu0 %v3728_v0  ;;  %3200 = vmatprep.subr.bf16.mxu1 %v3728_v0 }
 0x14a   :  { %3194 = vmatprep.mubr.msk.bf16.mxu0 %vm3729_vm0, %v3728_v0  ;;  %3214 = vmatprep.mubr.msk.bf16.mxu1 %vm3729_vm0, %v3728_v0 }
 0x14c   :  { %3181 = vmatpush3.bf16.msra.mxu0 %v3642_v33  ;;  %3201 = vmatpush3.bf16.msra.mxu1 %v3643_v36  ;;  %v3650_v36 = vld [vmem:[#allocation2 + $0xa8] sm:$0xff]  }
 0x14d   :  { %3182 = vmatprep.subr.bf16.mxu0 %v3728_v0  ;;  %3202 = vmatprep.subr.bf16.mxu1 %v3728_v0 }
 0x150   :  { %3183 = vmatpush3.bf16.msra.mxu0 %v3644_v26  ;;  %3203 = vmatpush3.bf16.msra.mxu1 %v3645_v28  ;;  %v3651_v28 = vld [vmem:[#allocation2 + $0xe8] sm:$0xff]  }
 0x151   :  { %3184 = vmatprep.subr.bf16.mxu0 %v3728_v0  ;;  %3204 = vmatprep.subr.bf16.mxu1 %v3728_v0 }
 0x154   :  { %3185 = vmatpush3.bf16.msra.mxu0 %v3646_v38  ;;  %3205 = vmatpush3.bf16.msra.mxu1 %v3647_v53 }
 0x155   :  { %3186 = vmatprep.subr.bf16.mxu0 %v3728_v0  ;;  %3206 = vmatprep.subr.bf16.mxu1 %v3728_v0 }
 0x158   :  { %3187 = vmatpush3.bf16.msra.mxu0 %v3648_v42  ;;  %3207 = vmatpush3.bf16.msra.mxu1 %v3649_v40  ;;  %v3652_v42 = vld [vmem:[#allocation2 + $0xb0] sm:$0xff]  }
 0x159   :  { %3188 = vmatprep.subr.bf16.mxu0 %v3728_v0  ;;  %3208 = vmatprep.subr.bf16.mxu1 %v3728_v0  ;;  %v3653_v40 = vld [vmem:[#allocation2 + $0xf0] sm:$0xff]  }
 0x15a   :  { %v4313_v45 = vpop.f32.mrb[8].mxu0  ;;  %v4316_v47 = vpop.f32.mrb[8].mxu1 }
 0x15b   :  { %v2916_v34 = vpop.f32.mrb[9].mxu0  ;;  %v2936_v35 = vpop.f32.mrb[9].mxu1 }
 0x15c   :  { %v757_v33 = vpop.f32.mrb[10].mxu0  ;;  %3189 = vmatpush3.bf16.msra.mxu0 %v3650_v36  ;;  %v845_v26 = vpop.f32.mrb[10].mxu1  ;;  %3209 = vmatpush3.bf16.msra.mxu1 %v3651_v28  ;;  %v3654_v34 = vld [vmem:[#allocation2 + $0xb8] sm:$0xff]   ;;  %v3657_v36 = vld [vmem:[#allocation2 + $0x140] sm:$0xff]   ;;  %v3659_v28 = vld [vmem:[#allocation2 + $0x148] sm:$0xff]  }
 0x15d   :  { %v2917_v38 = vpop.f32.mrb[11].mxu0  ;;  %3190 = vmatprep.subr.bf16.mxu0 %v3728_v0  ;;  %v2937_v53 = vpop.f32.mrb[11].mxu1  ;;  %3210 = vmatprep.subr.bf16.mxu1 %v3728_v0  ;;  %v3655_v35 = vld [vmem:[#allocation2 + $0xf8] sm:$0xff]   ;;  %v3656_v33 = vld [vmem:[#allocation2 + $0x100] sm:$0xff]   ;;  %v3658_v26 = vld [vmem:[#allocation2 + $0x108] sm:$0xff]  }
 0x15e   :  { %v3662_v38 = vld [vmem:[#allocation2 + $0x118] sm:$0xff]  }
 0x15f   :  { %v3663_v53 = vld [vmem:[#allocation2 + $0x158] sm:$0xff]  }
 0x160   :  { %3191 = vmatpush3.bf16.msra.mxu0 %v3652_v42  ;;  %3211 = vmatpush3.bf16.msra.mxu1 %v3653_v40  ;;  %v3664_v42 = vld [vmem:[#allocation2 + $0x120] sm:$0xff]  }
 0x161   :  { %3192 = vmatprep.subr.bf16.mxu0 %v3728_v0  ;;  %3212 = vmatprep.subr.bf16.mxu1 %v3728_v0  ;;  %v3665_v40 = vld [vmem:[#allocation2 + $0x160] sm:$0xff]  }
 0x164   :  { %3193 = vmatpush3.bf16.msra.mxu0 %v3654_v34  ;;  %3213 = vmatpush3.bf16.msra.mxu1 %v3655_v35 }
 0x165   :  { %3218 = vmatprep.subr.bf16.mxu0 %v3728_v0  ;;  %3238 = vmatprep.subr.bf16.mxu1 %v3728_v0 }
 0x167   :  { %3195 = vmatmul.mubr.bf16.vlgmr.msra.gmra.mrb[36].mxu0 %v4098_v44  ;;  %3215 = vmatmul.mubr.bf16.vlgmr.msra.gmra.mrb[36].mxu1 %v4106_v46  ;;  %v3660_v44 = vld [vmem:[#allocation2 + $0x110] sm:$0xff]  }
 0x168   :  { %3219 = vmatpush3.bf16.msra.mxu0 %v3656_v33  ;;  %3239 = vmatpush3.bf16.msra.mxu1 %v3657_v36  ;;  %v3661_v46 = vld [vmem:[#allocation2 + $0x150] sm:$0xff]  }
 0x169   :  { %3220 = vmatprep.subr.bf16.mxu0 %v3728_v0  ;;  %3240 = vmatprep.subr.bf16.mxu1 %v3728_v0 }
 0x16a   :  { %3234 = vmatprep.mubr.msk.bf16.mxu0 %vm3729_vm0, %v3728_v0  ;;  %3254 = vmatprep.mubr.msk.bf16.mxu1 %vm3729_vm0, %v3728_v0 }
 0x16c   :  { %3221 = vmatpush3.bf16.msra.mxu0 %v3658_v26  ;;  %3241 = vmatpush3.bf16.msra.mxu1 %v3659_v28  ;;  %v3666_v28 = vld [vmem:[#allocation2 + $0x128] sm:$0xff]  }
 0x16d   :  { %3222 = vmatprep.subr.bf16.mxu0 %v3728_v0  ;;  %3242 = vmatprep.subr.bf16.mxu1 %v3728_v0 }
 0x170   :  { %3223 = vmatpush3.bf16.msra.mxu0 %v3660_v44  ;;  %3243 = vmatpush3.bf16.msra.mxu1 %v3661_v46  ;;  %v3667_v46 = vld [vmem:[#allocation2 + $0x168] sm:$0xff]  }
 0x171   :  { %3224 = vmatprep.subr.bf16.mxu0 %v3728_v0  ;;  %3244 = vmatprep.subr.bf16.mxu1 %v3728_v0 }
 0x174   :  { %3225 = vmatpush3.bf16.msra.mxu0 %v3662_v38  ;;  %3245 = vmatpush3.bf16.msra.mxu1 %v3663_v53 }
 0x175   :  { %3226 = vmatprep.subr.bf16.mxu0 %v3728_v0  ;;  %3246 = vmatprep.subr.bf16.mxu1 %v3728_v0 }
 0x178   :  { %3227 = vmatpush3.bf16.msra.mxu0 %v3664_v42  ;;  %3247 = vmatpush3.bf16.msra.mxu1 %v3665_v40  ;;  %v4725_v42 = vld [vmem:[#allocation25_spill] sm:$0xff]  ;;  %v4726_v40 = vld [vmem:[#allocation26_spill] sm:$0xff] }
 0x179   :  { %3228 = vmatprep.subr.bf16.mxu0 %v3728_v0  ;;  %3248 = vmatprep.subr.bf16.mxu1 %v3728_v0 }
 0x17a   :  { %v4339_v34 = vpop.f32.mrb[12].mxu0  ;;  %v4342_v35 = vpop.f32.mrb[12].mxu1 }
 0x17b   :  { %v2956_v33 = vpop.f32.mrb[13].mxu0  ;;  %v2976_v36 = vpop.f32.mrb[13].mxu1 }
 0x17c   :  { %v933_v26 = vpop.f32.mrb[14].mxu0  ;;  %3229 = vmatpush3.bf16.msra.mxu0 %v3666_v28  ;;  %v1021_v44 = vpop.f32.mrb[14].mxu1  ;;  %3249 = vmatpush3.bf16.msra.mxu1 %v3667_v46  ;;  %v4727_v33 = vld [vmem:[#allocation27_spill] sm:$0xff]  ;;  %v4728_v36 = vld [vmem:[#allocation28_spill] sm:$0xff] }
 0x17d   :  { %v2957_v38 = vpop.f32.mrb[15].mxu0  ;;  %3230 = vmatprep.subr.bf16.mxu0 %v3728_v0  ;;  %v2977_v53 = vpop.f32.mrb[15].mxu1  ;;  %3250 = vmatprep.subr.bf16.mxu1 %v3728_v0 }
 0x180   :  { %3231 = vmatpush3.bf16.msra.mxu0 %v3852_v49  ;;  %3251 = vmatpush3.bf16.msra.mxu1 %v3855_v50 }
 0x181   :  { %3232 = vmatprep.subr.bf16.mxu0 %v3728_v0  ;;  %3252 = vmatprep.subr.bf16.mxu1 %v3728_v0 }
 0x184   :  { %3233 = vmatpush3.bf16.msra.mxu0 %v3859_v51  ;;  %3253 = vmatpush3.bf16.msra.mxu1 %v3863_v52 }
 0x185   :  { %3258 = vmatprep.subr.bf16.mxu0 %v3728_v0  ;;  %3278 = vmatprep.subr.bf16.mxu1 %v3728_v0 }
 0x187   :  { %3235 = vmatmul.mubr.bf16.vlgmr.msra.gmra.mrb[40].mxu0 %v4178_v54  ;;  %3255 = vmatmul.mubr.bf16.vlgmr.msra.gmra.mrb[40].mxu1 %v4186_v9  ;;  %v4718_v54 = vld [vmem:[#allocation18_spill] sm:$0xff]  ;;  %v3671_v9 = vld [vmem:[%s4616_s0 + $0xc] sm:$0xf] }
 0x188   :  { %3259 = vmatpush3.bf16.msra.mxu0 %v3873_v55  ;;  %3279 = vmatpush3.bf16.msra.mxu1 %v3877_v56 }
 0x189   :  { %3260 = vmatprep.subr.bf16.mxu0 %v3728_v0  ;;  %3280 = vmatprep.subr.bf16.mxu1 %v3728_v0 }
 0x18a   :  { %3274 = vmatprep.mubr.msk.bf16.mxu0 %vm3729_vm0, %v3728_v0  ;;  %3294 = vmatprep.mubr.msk.bf16.mxu1 %vm3729_vm0, %v3728_v0 }
 0x18c   :  { %3261 = vmatpush3.bf16.msra.mxu0 %v3881_v57  ;;  %3281 = vmatpush3.bf16.msra.mxu1 %v3885_v58 }
 0x18d   :  { %3262 = vmatprep.subr.bf16.mxu0 %v3728_v0  ;;  %3282 = vmatprep.subr.bf16.mxu1 %v3728_v0 }
 0x190   :  { %3263 = vmatpush3.bf16.msra.mxu0 %v3893_v59  ;;  %3283 = vmatpush3.bf16.msra.mxu1 %v3897_v60 }
 0x191   :  { %3264 = vmatprep.subr.bf16.mxu0 %v3728_v0  ;;  %3284 = vmatprep.subr.bf16.mxu1 %v3728_v0 }
 0x194   :  { %3265 = vmatpush3.bf16.msra.mxu0 %v3901_v61  ;;  %3285 = vmatpush3.bf16.msra.mxu1 %v3905_v62 }
 0x195   :  { %3266 = vmatprep.subr.bf16.mxu0 %v3728_v0  ;;  %3286 = vmatprep.subr.bf16.mxu1 %v3728_v0 }
 0x198   :  { %3267 = vmatpush3.bf16.msra.mxu0 %v3909_v63  ;;  %3287 = vmatpush3.bf16.msra.mxu1 %v3913_v1 }
 0x199   :  { %3268 = vmatprep.subr.bf16.mxu0 %v3728_v0  ;;  %3288 = vmatprep.subr.bf16.mxu1 %v3728_v0 }
 0x19a   :  { %v1106_v49 = vpop.f32.mrb[16].mxu0  ;;  %v1194_v51 = vpop.f32.mrb[16].mxu1 }
 0x19b   :  { %v2048_v50 = vsub.f32 %v4237_v8, %v1106_v49  ;;  %v2996_v52 = vpop.f32.mrb[17].mxu0  ;;  %v2049_v55 = vsub.f32 %v4240_v43, %v1194_v51  ;;  %v3016_v56 = vpop.f32.mrb[17].mxu1  ;;  %v4717_v43 = vld [vmem:[#allocation17_spill] sm:$0xff] }
 0x19c   :  { %v1109_v57 = vpop.f32.mrb[18].mxu0  ;;  %3269 = vmatpush3.bf16.msra.mxu0 %v3917_v2  ;;  %v1197_v58 = vpop.f32.mrb[18].mxu1  ;;  %3289 = vmatpush3.bf16.msra.mxu1 %v3921_v3  ;;  %v3670_v8 = vld [vmem:[%s4616_s0 + $0x8] sm:$0xf]  ;;  %v4730_v52 = vld [vmem:[#allocation30_spill] sm:$0xff]  ;;  %v4732_v56 = vld [vmem:[#allocation32_spill] sm:$0xff] }
 0x19d   :  { %2056 = vst [vmem:[%s4620_s4] sm:$0xff] %v2048_v50  ;;  %v2997_v59 = vpop.f32.mrb[19].mxu0  ;;  %3270 = vmatprep.subr.bf16.mxu0 %v3728_v0  ;;  %2057 = vst [vmem:[%s4620_s4 + $0x8] sm:$0xff] %v2049_v55  ;;  %v3017_v60 = vpop.f32.mrb[19].mxu1  ;;  %3290 = vmatprep.subr.bf16.mxu1 %v3728_v0  ;;  %v4729_v50 = vld [vmem:[#allocation29_spill] sm:$0xff]  ;;  %v4734_v58 = vld [vmem:[#allocation34_spill] sm:$0xff] }
 0x19e   :  { %v4733_v57 = vld [vmem:[#allocation33_spill] sm:$0xff]  ;;  %v3672_v59 = vld [vmem:[%s4616_s0 + $0x10] sm:$0xf]  ;;  %v3673_v60 = vld [vmem:[%s4616_s0 + $0x14] sm:$0xf] }
 0x1a0   :  { %3271 = vmatpush3.bf16.msra.mxu0 %v3925_v4  ;;  %3291 = vmatpush3.bf16.msra.mxu1 %v3929_v5 }
 0x1a1   :  { %3272 = vmatprep.subr.bf16.mxu0 %v3728_v0  ;;  %3292 = vmatprep.subr.bf16.mxu1 %v3728_v0 }
 0x1a4   :  { %3273 = vmatpush3.bf16.msra.mxu0 %v3933_v6  ;;  %3293 = vmatpush3.bf16.msra.mxu1 %v3937_v7 }
 0x1a5   :  { %3298 = vmatprep.subr.bf16.mxu0 %v3728_v0  ;;  %3318 = vmatprep.subr.bf16.mxu1 %v3728_v0 }
 0x1a7   :  { %3275 = vmatmul.mubr.bf16.vlgmr.msra.gmra.mrb[44].mxu0 %v4262_v37  ;;  %3295 = vmatmul.mubr.bf16.vlgmr.msra.gmra.mrb[44].mxu1 %v4268_v39  ;;  %v4719_v37 = vld [vmem:[#allocation19_spill] sm:$0xff]  ;;  %v4720_v39 = vld [vmem:[#allocation20_spill] sm:$0xff] }
 0x1a8   :  { %3299 = vmatpush3.bf16.msra.mxu0 %v3947_v10  ;;  %3319 = vmatpush3.bf16.msra.mxu1 %v3951_v11  ;;  %v3668_v10 = vld [vmem:[%s4616_s0] sm:$0xf]  ;;  %v3669_v11 = vld [vmem:[%s4616_s0 + $0x4] sm:$0xf] }
 0x1a9   :  { %3300 = vmatprep.subr.bf16.mxu0 %v3728_v0  ;;  %3320 = vmatprep.subr.bf16.mxu1 %v3728_v0 }
 0x1aa   :  { %3314 = vmatprep.mubr.msk.bf16.mxu0 %vm3729_vm0, %v3728_v0  ;;  %3334 = vmatprep.mubr.msk.bf16.mxu1 %vm3729_vm0, %v3728_v0 }
 0x1ac   :  { %3301 = vmatpush3.bf16.msra.mxu0 %v3955_v12  ;;  %3321 = vmatpush3.bf16.msra.mxu1 %v3959_v13  ;;  %v4708_v12 = vld [vmem:[#allocation8_spill] sm:$0xff]  ;;  %v4709_v13 = vld [vmem:[#allocation9_spill] sm:$0xff] }
 0x1ad   :  { %3302 = vmatprep.subr.bf16.mxu0 %v3728_v0  ;;  %3322 = vmatprep.subr.bf16.mxu1 %v3728_v0 }
 0x1b0   :  { %3303 = vmatpush3.bf16.msra.mxu0 %v3967_v14  ;;  %3323 = vmatpush3.bf16.msra.mxu1 %v3971_v15  ;;  %v4710_v14 = vld [vmem:[#allocation10_spill] sm:$0xff]  ;;  %v4711_v15 = vld [vmem:[#allocation11_spill] sm:$0xff] }
 0x1b1   :  { %3304 = vmatprep.subr.bf16.mxu0 %v3728_v0  ;;  %3324 = vmatprep.subr.bf16.mxu1 %v3728_v0 }
 0x1b4   :  { %3305 = vmatpush3.bf16.msra.mxu0 %v3975_v16  ;;  %3325 = vmatpush3.bf16.msra.mxu1 %v3979_v17  ;;  %v4712_v16 = vld [vmem:[#allocation12_spill] sm:$0xff] }
 0x1b5   :  { %3306 = vmatprep.subr.bf16.mxu0 %v3728_v0  ;;  %3326 = vmatprep.subr.bf16.mxu1 %v3728_v0 }
 0x1b8   :  { %3307 = vmatpush3.bf16.msra.mxu0 %v3983_v18  ;;  %3327 = vmatpush3.bf16.msra.mxu1 %v3987_v19 }
 0x1b9   :  { %3308 = vmatprep.subr.bf16.mxu0 %v3728_v0  ;;  %3328 = vmatprep.subr.bf16.mxu1 %v3728_v0 }
 0x1ba   :  { %v1282_v61 = vpop.f32.mrb[20].mxu0  ;;  %v1370_v63 = vpop.f32.mrb[20].mxu1 }
 0x1bb   :  { %v2050_v62 = vsub.f32 %v4287_v41, %v1282_v61  ;;  %v3036_v1 = vpop.f32.mrb[21].mxu0  ;;  %v2051_v2 = vsub.f32 %v4290_v48, %v1370_v63  ;;  %v3056_v3 = vpop.f32.mrb[21].mxu1  ;;  %v4721_v41 = vld [vmem:[#allocation21_spill] sm:$0xff]  ;;  %v4722_v48 = vld [vmem:[#allocation22_spill] sm:$0xff]  ;;  %v4735_v61 = vld [vmem:[#allocation35_spill] sm:$0xff] }
 0x1bc   :  { %v1285_v4 = vpop.f32.mrb[22].mxu0  ;;  %3309 = vmatpush3.bf16.msra.mxu0 %v3991_v20  ;;  %v1373_v5 = vpop.f32.mrb[22].mxu1  ;;  %3329 = vmatpush3.bf16.msra.mxu1 %v3995_v21  ;;  %v4737_v63 = vld [vmem:[#allocation37_spill] sm:$0xff]  ;;  %v4738_v1 = vld [vmem:[#allocation38_spill] sm:$0xff]  ;;  %v4740_v3 = vld [vmem:[#allocation40_spill] sm:$0xff] }
 0x1bd   :  { %2058 = vst [vmem:[%s4620_s4 + $0x10] sm:$0xff] %v2050_v62  ;;  %v3037_v6 = vpop.f32.mrb[23].mxu0  ;;  %3310 = vmatprep.subr.bf16.mxu0 %v3728_v0  ;;  %2059 = vst [vmem:[%s4620_s4 + $0x18] sm:$0xff] %v2051_v2  ;;  %v3057_v7 = vpop.f32.mrb[23].mxu1  ;;  %3330 = vmatprep.subr.bf16.mxu1 %v3728_v0  ;;  %v4736_v62 = vld [vmem:[#allocation36_spill] sm:$0xff]  ;;  %v4739_v2 = vld [vmem:[#allocation39_spill] sm:$0xff] }
 0x1be   :  { %v4741_v4 = vld [vmem:[#allocation41_spill] sm:$0xff]  ;;  %v4742_v5 = vld [vmem:[#allocation42_spill] sm:$0xff]  ;;  %v4743_v6 = vld [vmem:[#allocation43_spill] sm:$0xff] }
 0x1bf   :  { %v4744_v7 = vld [vmem:[#allocation44_spill] sm:$0xff] }
 0x1c0   :  { %3311 = vmatpush3.bf16.msra.mxu0 %v3999_v22  ;;  %3331 = vmatpush3.bf16.msra.mxu1 %v4003_v23 }
 0x1c1   :  { %3312 = vmatprep.subr.bf16.mxu0 %v3728_v0  ;;  %3332 = vmatprep.subr.bf16.mxu1 %v3728_v0 }
 0x1c4   :  { %3313 = vmatpush3.bf16.msra.mxu0 %v4007_v24  ;;  %3333 = vmatpush3.bf16.msra.mxu1 %v4011_v25  ;;  %v4713_v24 = vld [vmem:[#allocation13_spill] sm:$0xff] }
 0x1c5   :  { %3338 = vmatprep.subr.bf16.mxu0 %v3728_v0  ;;  %3358 = vmatprep.subr.bf16.mxu1 %v3728_v0 }
 0x1c7   :  { %3315 = vmatmul.mubr.bf16.vlgmr.msra.gmra.mrb[32].mxu0 %v3668_v10  ;;  %3335 = vmatmul.mubr.bf16.vlgmr.msra.gmra.mrb[32].mxu1 %v3669_v11  ;;  %v4745_v10 = vld [vmem:[#allocation45_spill] sm:$0xff]  ;;  %v4746_v11 = vld [vmem:[#allocation46_spill] sm:$0xff] }
 0x1c8   :  { %3339 = vmatpush3.bf16.msra.mxu0 %v4020_v27  ;;  %3359 = vmatpush3.bf16.msra.mxu1 %v4029_v29  ;;  %v4714_v27 = vld [vmem:[#allocation14_spill] sm:$0xff] }
 0x1c9   :  { %3340 = vmatprep.subr.bf16.mxu0 %v3728_v0  ;;  %3360 = vmatprep.subr.bf16.mxu1 %v3728_v0 }
 0x1ca   :  { %3354 = vmatprep.mubr.msk.bf16.mxu0 %vm3729_vm0, %v3728_v0  ;;  %3374 = vmatprep.mubr.msk.bf16.mxu1 %vm3729_vm0, %v3728_v0 }
 0x1cc   :  { %3341 = vmatpush3.bf16.msra.mxu0 %v4035_v30  ;;  %3361 = vmatpush3.bf16.msra.mxu1 %v4039_v31  ;;  %v4715_v31 = vld [vmem:[#allocation15_spill] sm:$0xff] }
 0x1cd   :  { %3342 = vmatprep.subr.bf16.mxu0 %v3728_v0  ;;  %3362 = vmatprep.subr.bf16.mxu1 %v3728_v0 }
 0x1d0   :  { %3343 = vmatpush3.bf16.msra.mxu0 %v4047_v32  ;;  %3363 = vmatpush3.bf16.msra.mxu1 %v4708_v12  ;;  %v4716_v32 = vld [vmem:[#allocation16_spill] sm:$0xff]  ;;  %v4747_v12 = vld [vmem:[#allocation47_spill] sm:$0xff] }
 0x1d1   :  { %3344 = vmatprep.subr.bf16.mxu0 %v3728_v0  ;;  %3364 = vmatprep.subr.bf16.mxu1 %v3728_v0 }
 0x1d4   :  { %3345 = vmatpush3.bf16.msra.mxu0 %v4709_v13  ;;  %3365 = vmatpush3.bf16.msra.mxu1 %v4710_v14  ;;  %v4748_v13 = vld [vmem:[#allocation48_spill] sm:$0xff]  ;;  %v4749_v14 = vld [vmem:[#allocation49_spill] sm:$0xff] }
 0x1d5   :  { %3346 = vmatprep.subr.bf16.mxu0 %v3728_v0  ;;  %3366 = vmatprep.subr.bf16.mxu1 %v3728_v0 }
 0x1d8   :  { %3347 = vmatpush3.bf16.msra.mxu0 %v4711_v15  ;;  %3367 = vmatpush3.bf16.msra.mxu1 %v4712_v16  ;;  %v4750_v15 = vld [vmem:[#allocation50_spill] sm:$0xff]  ;;  %v3674_v16 = vld [vmem:[%s4616_s0 + $0x18] sm:$0xf] }
 0x1d9   :  { %3348 = vmatprep.subr.bf16.mxu0 %v3728_v0  ;;  %3368 = vmatprep.subr.bf16.mxu1 %v3728_v0 }
 0x1da   :  { %v1458_v17 = vpop.f32.mrb[24].mxu0  ;;  %v1546_v19 = vpop.f32.mrb[24].mxu1 }
 0x1db   :  { %v2052_v18 = vsub.f32 %v4313_v45, %v1458_v17  ;;  %v3076_v20 = vpop.f32.mrb[25].mxu0  ;;  %v2053_v21 = vsub.f32 %v4316_v47, %v1546_v19  ;;  %v3096_v22 = vpop.f32.mrb[25].mxu1  ;;  %v4723_v45 = vld [vmem:[#allocation23_spill] sm:$0xff]  ;;  %v4724_v47 = vld [vmem:[#allocation24_spill] sm:$0xff] }
 0x1dc   :  { %v1461_v23 = vpop.f32.mrb[26].mxu0  ;;  %3349 = vmatpush3.bf16.msra.mxu0 %v4713_v24  ;;  %v1549_v25 = vpop.f32.mrb[26].mxu1  ;;  %3369 = vmatpush3.bf16.msra.mxu1 %v4714_v27  ;;  %v3675_v17 = vld [vmem:[%s4616_s0 + $0x1c] sm:$0xf] }
 0x1dd   :  { %2060 = vst [vmem:[%s4620_s4 + $0x20] sm:$0xff] %v2052_v18  ;;  %v3077_v29 = vpop.f32.mrb[27].mxu0  ;;  %3350 = vmatprep.subr.bf16.mxu0 %v3728_v0  ;;  %2061 = vst [vmem:[%s4620_s4 + $0x28] sm:$0xff] %v2053_v21  ;;  %v3097_v30 = vpop.f32.mrb[27].mxu1  ;;  %3370 = vmatprep.subr.bf16.mxu1 %v3728_v0 }
 0x1e0   :  { %3351 = vmatpush3.bf16.msra.mxu0 %v4715_v31  ;;  %3371 = vmatpush3.bf16.msra.mxu1 %v4716_v32 }
 0x1e1   :  { %3352 = vmatprep.subr.bf16.mxu0 %v3728_v0  ;;  %3372 = vmatprep.subr.bf16.mxu1 %v3728_v0 }
 0x1e4   :  { %3353 = vmatpush3.bf16.msra.mxu0 %v4717_v43  ;;  %3373 = vmatpush3.bf16.msra.mxu1 %v4718_v54 }
 0x1e5   :  { %3378 = vmatprep.subr.bf16.mxu0 %v3728_v0  ;;  %3398 = vmatprep.subr.bf16.mxu1 %v3728_v0 }
 0x1e7   :  { %3355 = vmatmul.mubr.bf16.vlgmr.msra.gmra.mrb[36].mxu0 %v3670_v8  ;;  %3375 = vmatmul.mubr.bf16.vlgmr.msra.gmra.mrb[36].mxu1 %v3671_v9 }
 0x1e8   :  { %3379 = vmatpush3.bf16.msra.mxu0 %v4719_v37  ;;  %3399 = vmatpush3.bf16.msra.mxu1 %v4720_v39 }
 0x1e9   :  { %3380 = vmatprep.subr.bf16.mxu0 %v3728_v0  ;;  %3400 = vmatprep.subr.bf16.mxu1 %v3728_v0 }
 0x1ea   :  { %3394 = vmatprep.mubr.msk.bf16.mxu0 %vm3729_vm0, %v3728_v0  ;;  %3414 = vmatprep.mubr.msk.bf16.mxu1 %vm3729_vm0, %v3728_v0 }
 0x1ec   :  { %3381 = vmatpush3.bf16.msra.mxu0 %v4721_v41  ;;  %3401 = vmatpush3.bf16.msra.mxu1 %v4722_v48 }
 0x1ed   :  { %3382 = vmatprep.subr.bf16.mxu0 %v3728_v0  ;;  %3402 = vmatprep.subr.bf16.mxu1 %v3728_v0 }
 0x1f0   :  { %3383 = vmatpush3.bf16.msra.mxu0 %v4723_v45  ;;  %3403 = vmatpush3.bf16.msra.mxu1 %v4724_v47 }
 0x1f1   :  { %3384 = vmatprep.subr.bf16.mxu0 %v3728_v0  ;;  %3404 = vmatprep.subr.bf16.mxu1 %v3728_v0 }
 0x1f4   :  { %3385 = vmatpush3.bf16.msra.mxu0 %v4725_v42  ;;  %3405 = vmatpush3.bf16.msra.mxu1 %v4726_v40 }
 0x1f5   :  { %3386 = vmatprep.subr.bf16.mxu0 %v3728_v0  ;;  %3406 = vmatprep.subr.bf16.mxu1 %v3728_v0 }
 0x1f8   :  { %3387 = vmatpush3.bf16.msra.mxu0 %v4727_v33  ;;  %3407 = vmatpush3.bf16.msra.mxu1 %v4728_v36 }
 0x1f9   :  { %3388 = vmatprep.subr.bf16.mxu0 %v3728_v0  ;;  %3408 = vmatprep.subr.bf16.mxu1 %v3728_v0 }
 0x1fa   :  { %v1634_v26 = vpop.f32.mrb[28].mxu0  ;;  %v1722_v44 = vpop.f32.mrb[28].mxu1 }
 0x1fb   :  { %v2054_v28 = vsub.f32 %v4339_v34, %v1634_v26  ;;  %v3116_v46 = vpop.f32.mrb[29].mxu0  ;;  %v2055_v38 = vsub.f32 %v4342_v35, %v1722_v44  ;;  %v3136_v53 = vpop.f32.mrb[29].mxu1  ;;  %v4731_v35 = vld [vmem:[#allocation31_spill] sm:$0xff] }
 0x1fc   :  { %v1637_v49 = vpop.f32.mrb[30].mxu0  ;;  %3389 = vmatpush3.bf16.msra.mxu0 %v4729_v50  ;;  %v1725_v51 = vpop.f32.mrb[30].mxu1  ;;  %3409 = vmatpush3.bf16.msra.mxu1 %v4730_v52 }
 0x1fd   :  { %2062 = vst [vmem:[%s4620_s4 + $0x30] sm:$0xff] %v2054_v28  ;;  %v3117_v55 = vpop.f32.mrb[31].mxu0  ;;  %3390 = vmatprep.subr.bf16.mxu0 %v3728_v0  ;;  %2063 = vst [vmem:[%s4620_s4 + $0x38] sm:$0xff] %v2055_v38  ;;  %v3137_v34 = vpop.f32.mrb[31].mxu1  ;;  %3410 = vmatprep.subr.bf16.mxu1 %v3728_v0 }
 0x200   :  { %3391 = vmatpush3.bf16.msra.mxu0 %v4731_v35  ;;  %3411 = vmatpush3.bf16.msra.mxu1 %v4732_v56 }
 0x201   :  { %3392 = vmatprep.subr.bf16.mxu0 %v3728_v0  ;;  %3412 = vmatprep.subr.bf16.mxu1 %v3728_v0 }
 0x204   :  { %3393 = vmatpush3.bf16.msra.mxu0 %v4733_v57  ;;  %3413 = vmatpush3.bf16.msra.mxu1 %v4734_v58 }
 0x205   :  { %3418 = vmatprep.subr.bf16.mxu0 %v3728_v0  ;;  %3438 = vmatprep.subr.bf16.mxu1 %v3728_v0 }
 0x207   :  { %3395 = vmatmul.mubr.bf16.vlgmr.msra.gmra.mrb[40].mxu0 %v3672_v59  ;;  %3415 = vmatmul.mubr.bf16.vlgmr.msra.gmra.mrb[40].mxu1 %v3673_v60 }
 0x208   :  { %3419 = vmatpush3.bf16.msra.mxu0 %v4735_v61  ;;  %3439 = vmatpush3.bf16.msra.mxu1 %v4736_v62 }
 0x209   :  { %3420 = vmatprep.subr.bf16.mxu0 %v3728_v0  ;;  %3440 = vmatprep.subr.bf16.mxu1 %v3728_v0 }
 0x20a   :  { %3434 = vmatprep.mubr.msk.bf16.mxu0 %vm3729_vm0, %v3728_v0  ;;  %3454 = vmatprep.mubr.msk.bf16.mxu1 %vm3729_vm0, %v3728_v0 }
 0x20c   :  { %3421 = vmatpush3.bf16.msra.mxu0 %v4737_v63  ;;  %3441 = vmatpush3.bf16.msra.mxu1 %v4738_v1 }
 0x20d   :  { %3422 = vmatprep.subr.bf16.mxu0 %v3728_v0  ;;  %3442 = vmatprep.subr.bf16.mxu1 %v3728_v0 }
 0x210   :  { %3423 = vmatpush3.bf16.msra.mxu0 %v4739_v2  ;;  %3443 = vmatpush3.bf16.msra.mxu1 %v4740_v3 }
 0x211   :  { %3424 = vmatprep.subr.bf16.mxu0 %v3728_v0  ;;  %3444 = vmatprep.subr.bf16.mxu1 %v3728_v0 }
 0x214   :  { %3425 = vmatpush3.bf16.msra.mxu0 %v4741_v4  ;;  %3445 = vmatpush3.bf16.msra.mxu1 %v4742_v5 }
 0x215   :  { %3426 = vmatprep.subr.bf16.mxu0 %v3728_v0  ;;  %3446 = vmatprep.subr.bf16.mxu1 %v3728_v0 }
 0x218   :  { %3427 = vmatpush3.bf16.msra.mxu0 %v4743_v6  ;;  %3447 = vmatpush3.bf16.msra.mxu1 %v4744_v7 }
 0x219   :  { %3428 = vmatprep.subr.bf16.mxu0 %v3728_v0  ;;  %3448 = vmatprep.subr.bf16.mxu1 %v3728_v0 }
 0x21c   :  { %3429 = vmatpush3.bf16.msra.mxu0 %v4745_v10  ;;  %3449 = vmatpush3.bf16.msra.mxu1 %v4746_v11 }
 0x21d   :  { %3430 = vmatprep.subr.bf16.mxu0 %v3728_v0  ;;  %3450 = vmatprep.subr.bf16.mxu1 %v3728_v0 }
 0x220   :  { %3431 = vmatpush3.bf16.msra.mxu0 %v4747_v12  ;;  %3451 = vmatpush3.bf16.msra.mxu1 %v4748_v13 }
 0x221   :  { %3432 = vmatprep.subr.bf16.mxu0 %v3728_v0  ;;  %3452 = vmatprep.subr.bf16.mxu1 %v3728_v0 }
 0x224   :  { %3433 = vmatpush3.bf16.msra.mxu0 %v4749_v14  ;;  %3453 = vmatpush3.bf16.msra.mxu1 %v4750_v15 }
 0x227   :  { %3435 = vmatmul.mubr.bf16.vlgmr.msra.gmra.mrb[44].mxu0 %v3674_v16  ;;  %3455 = vmatmul.mubr.bf16.vlgmr.msra.gmra.mrb[44].mxu1 %v3675_v17 }
 0x29a   :  { %v2098_v18 = vpop.f32.mrb[32].mxu0  ;;  %v2138_v0 = vpop.f32.mrb[32].mxu1 }
 0x29b   :  { %2384 = vst [vmem:[%s4621_s5] sm:$0xff] %v2098_v18  ;;  %v3316_v19 = vpop.f32.mrb[33].mxu0  ;;  %2385 = vst [vmem:[%s4621_s5 + $0x8] sm:$0xff] %v2138_v0  ;;  %v3336_v20 = vpop.f32.mrb[33].mxu1 }
 0x29c   :  { %v2101_v21 = vpop.f32.mrb[34].mxu0  ;;  %v2141_v22 = vpop.f32.mrb[34].mxu1 }
 0x29d   :  { %v3317_v23 = vpop.f32.mrb[35].mxu0  ;;  %v3337_v24 = vpop.f32.mrb[35].mxu1 }
 0x2ba   :  { %v2178_v25 = vpop.f32.mrb[36].mxu0  ;;  %v2218_v27 = vpop.f32.mrb[36].mxu1 }
 0x2bb   :  { %2386 = vst [vmem:[%s4621_s5 + $0x10] sm:$0xff] %v2178_v25  ;;  %v3356_v29 = vpop.f32.mrb[37].mxu0  ;;  %2387 = vst [vmem:[%s4621_s5 + $0x18] sm:$0xff] %v2218_v27  ;;  %v3376_v30 = vpop.f32.mrb[37].mxu1 }
 0x2bc   :  { %v2181_v31 = vpop.f32.mrb[38].mxu0  ;;  %v2221_v32 = vpop.f32.mrb[38].mxu1 }
 0x2bd   :  { %v3357_v43 = vpop.f32.mrb[39].mxu0  ;;  %v3377_v54 = vpop.f32.mrb[39].mxu1 }
 0x2da   :  { %v2258_v8 = vpop.f32.mrb[40].mxu0  ;;  %v2298_v9 = vpop.f32.mrb[40].mxu1 }
 0x2db   :  { %2388 = vst [vmem:[%s4621_s5 + $0x20] sm:$0xff] %v2258_v8  ;;  %v3396_v37 = vpop.f32.mrb[41].mxu0  ;;  %2389 = vst [vmem:[%s4621_s5 + $0x28] sm:$0xff] %v2298_v9  ;;  %v3416_v39 = vpop.f32.mrb[41].mxu1 }
 0x2dc   :  { %v2261_v41 = vpop.f32.mrb[42].mxu0  ;;  %v2301_v48 = vpop.f32.mrb[42].mxu1 }
 0x2dd   :  { %v3397_v45 = vpop.f32.mrb[43].mxu0  ;;  %v3417_v47 = vpop.f32.mrb[43].mxu1 }
 0x2fa   :  { %v2338_v42 = vpop.f32.mrb[44].mxu0  ;;  %v2378_v40 = vpop.f32.mrb[44].mxu1 }
 0x2fb   :  { %2390 = vst [vmem:[%s4621_s5 + $0x30] sm:$0xff] %v2338_v42  ;;  %v3436_v33 = vpop.f32.mrb[45].mxu0  ;;  %2391 = vst [vmem:[%s4621_s5 + $0x38] sm:$0xff] %v2378_v40  ;;  %v3456_v36 = vpop.f32.mrb[45].mxu1 }
 0x2fc   :  { %v2341_v26 = vpop.f32.mrb[46].mxu0  ;;  %v2381_v28 = vpop.f32.mrb[46].mxu1 }
 0x2fd   :  { %v3437_v44 = vpop.f32.mrb[47].mxu0  ;;  %v3457_v46 = vpop.f32.mrb[47].mxu1 }
 0x2fe   :  { %2400 = vsyncpa [#allocation3], 1 }
 0x2ff   :  { %2401 = vsyncpa [#allocation5], 1 }

</bundles_post_ra>
